<compile_context>
chip_gen: v7x
topology: tpu7x:2x2x1
jax: 0.10.0
libtpu: 0.0.40
codegen_flags: <defaults>
</compile_context>

<pallas_src>
import functools

import jax
import jax.numpy as jnp
from jax.experimental import pallas as pl
from jax.experimental.pallas import tpu as pltpu


def _round_up(x, m):
    return (x + m - 1) // m * m


def _pick_channel_tile(cin_p, h, wa, itemsize):
    """Largest Cin tile (multiple of 128) whose double-buffered slab fits budget."""
    if cin_p <= 128:
        return cin_p
    budget = 24 * 1024 * 1024
    for t in (512, 256, 128):
        if cin_p % t == 0 and 2 * h * wa * t * itemsize <= budget:
            return t
    return 128 if cin_p % 128 == 0 else cin_p


def _vmem_limit_bytes(default=48 * 1024 * 1024):
    """VMEM limit: ~3/4 of physical capacity, capped at 100 MiB; safe fallback."""
    try:
        info = pltpu.get_tpu_info()
    except Exception:
        return default
    for attr in ("vmem_capacity_bytes", "vmem_size_bytes", "vmem_bytes"):
        cap = getattr(info, attr, None)
        if cap:
            return int(min(cap * 3 // 4, 100 * 1024 * 1024))
    return default


def _aspp_kernel(x_ref, w_ref, scale_ref, shift_ref, o_ref, acc_ref, tot_ref,
                 *, dil, pad):
    """One grid step: (batch n) x (Cout block j) x (Cin chunk c).

    x_ref:     (1, H, Wa, tc)       un-padded NHWC input chunk (bf16/f32)
    w_ref:     (KH, KW, Cin_p, tco) resident weights (bf16/f32)
    scale_ref: (1, tco)  f32        folded-BN scale
    shift_ref: (1, tco)  f32        folded-BN shift
    o_ref:     (1, Ho, Wa, tco)     output block (lane-dense Cout)
    acc_ref:   (KW, Ho, Wa, tco) f32  per-kw accumulators (input-column frame)
    tot_ref:   (Ho, Wa, tco) f32      epilogue combine buffer (output frame)
    """
    c = pl.program_id(2)
    n_c = pl.num_programs(2)
    _, H, Wa, tc = x_ref.shape
    KH, KW, cin_p, tco = w_ref.shape
    Ho = o_ref.shape[1]

    @pl.when(c == 0)
    def _init():
        acc_ref[...] = jnp.zeros_like(acc_ref)

    cstart = pl.multiple_of(c * tc, tc)

    # Static unroll over the (<=9) taps.  For each kh, the valid output-row
    # range is a compile-time constant; the matmul runs at full (padded) width
    # so all reshapes are tile-preserving and all acc updates are aligned.
    for kh in range(KH):
        dh = kh * dil - pad
        oh_lo = max(0, -dh)
        oh_hi = min(Ho, H - dh)
        if oh_lo >= oh_hi:
            continue
        nrows = oh_hi - oh_lo
        patch = x_ref[0, oh_lo + dh:oh_hi + dh, :, :]        # (nrows, Wa, tc)
        patch2 = patch.reshape(nrows * Wa, tc)               # Wa % 8 == 0 -> free
        for kw in range(KW):
            if cin_p == tc:
                w_chunk = w_ref[kh, kw]                      # (Cin_p, tco)
            else:
                w_chunk = w_ref[kh, kw, pl.ds(cstart, tc), :]
            contrib = jnp.dot(patch2, w_chunk,
                              preferred_element_type=jnp.float32)
            acc_ref[kw, oh_lo:oh_hi, :, :] += contrib.reshape(nrows, Wa, tco)

    @pl.when(c == n_c - 1)
    def _finalize():
        # Combine the KW accumulator planes with their static column shifts
        # (done once per output block, not once per tap per Cin chunk).
        tot_ref[...] = jnp.zeros_like(tot_ref)
        for kw in range(KW):
            dw = kw * dil - pad
            ow_lo = max(0, -dw)
            ow_hi = Wa - max(0, dw)
            if ow_lo >= ow_hi:
                continue
            tot_ref[:, ow_lo:ow_hi, :] += \
                acc_ref[kw, :, ow_lo + dw:ow_hi + dw, :]
        scale = scale_ref[...].reshape(1, 1, tco)
        shift = shift_ref[...].reshape(1, 1, tco)
        y = jnp.maximum(tot_ref[...] * scale + shift, 0.0)   # folded BN + ReLU
        o_ref[0] = y.astype(o_ref.dtype)


@functools.partial(jax.jit,
                   static_argnames=("padding", "dilation", "eps",
                                    "compute_dtype"))
def aspp_forward(x_nchw, weight_oihw, gamma, beta, running_mean, running_var,
                 *, padding, dilation, eps=1e-5, compute_dtype=jnp.bfloat16):
    """_ASPPModule forward: dilated conv (no bias) + BN (inference) + ReLU."""
    N, Cin, H, W = x_nchw.shape
    Cout, Cin_w, KH, KW = weight_oihw.shape
    assert Cin == Cin_w, (Cin, Cin_w)

    Ho = H + 2 * padding - dilation * (KH - 1)
    Wo = W + 2 * padding - dilation * (KW - 1)
    assert Ho >= 1 and Wo >= 1, (Ho, Wo)

    Wa = _round_up(max(W, Wo), 8)                 # W padded to a sublane multiple
    Cin_p = _round_up(Cin, 128) if Cin >= 128 else Cin
    Cout_p = _round_up(Cout, 128)                 # lane-dense output channels

    cdt = compute_dtype
    # ---- plain-JAX glue: layout, bf16 cast, minimal padding, BN folding ----
    x = jnp.transpose(x_nchw, (0, 2, 3, 1)).astype(cdt)          # NHWC
    x = jnp.pad(x, ((0, 0), (0, 0), (0, Wa - W), (0, Cin_p - Cin)))
    w = jnp.transpose(weight_oihw, (2, 3, 1, 0)).astype(cdt)     # (KH, KW, Cin, Cout)
    w = jnp.pad(w, ((0, 0), (0, 0), (0, Cin_p - Cin), (0, Cout_p - Cout)))

    scale = (gamma.astype(jnp.float32)
             / jnp.sqrt(running_var.astype(jnp.float32) + eps))
    shift = beta.astype(jnp.float32) - running_mean.astype(jnp.float32) * scale
    scale = jnp.pad(scale, (0, Cout_p - Cout)).reshape(1, Cout_p)
    shift = jnp.pad(shift, (0, Cout_p - Cout)).reshape(1, Cout_p)

    tc = _pick_channel_tile(Cin_p, H, Wa, jnp.dtype(cdt).itemsize)
    n_c = Cin_p // tc

    # Give the second TensorCore (v7x megacore) work when batch == 1.
    n_co = 2 if (N == 1 and Cout_p % 256 == 0) else 1
    tco = Cout_p // n_co

    kernel = functools.partial(_aspp_kernel, dil=dilation, pad=padding)

    out = pl.pallas_call(
        kernel,
        out_shape=jax.ShapeDtypeStruct((N, Ho, Wa, Cout_p), x_nchw.dtype),
        grid_spec=pltpu.PrefetchScalarGridSpec(
            num_scalar_prefetch=0,
            grid=(N, n_co, n_c),                        # Cin reduction axis last
            in_specs=[
                pl.BlockSpec((1, H, Wa, tc), lambda n, j, c: (n, 0, 0, c)),
                # Resident weights: block index is constant across (n, c).
                pl.BlockSpec((KH, KW, Cin_p, tco), lambda n, j, c: (0, 0, 0, j)),
                pl.BlockSpec((1, tco), lambda n, j, c: (0, j)),
                pl.BlockSpec((1, tco), lambda n, j, c: (0, j)),
            ],
            out_specs=pl.BlockSpec((1, Ho, Wa, tco), lambda n, j, c: (n, 0, 0, j)),
            scratch_shapes=[
                pltpu.VMEM((KW, Ho, Wa, tco), jnp.float32),
                pltpu.VMEM((Ho, Wa, tco), jnp.float32),
            ],
        ),
        compiler_params=pltpu.CompilerParams(
            dimension_semantics=("parallel", "parallel", "arbitrary"),
            vmem_limit_bytes=_vmem_limit_bytes(),
        ),
    )(x, w, scale, shift)

    out = out[:, :, :Wo, :Cout]                      # crop W / Cout padding
    return jnp.transpose(out, (0, 3, 1, 2))          # back to NCHW


class ASPPModule:
    """JAX/Pallas equivalent of PyTorch `_ASPPModule` (forward pass)."""

    def __init__(self, inplanes, planes, kernel_size, padding, dilation, key,
                 eps=1e-5, dtype=jnp.float32, compute_dtype=jnp.bfloat16):
        fan_in = inplanes * kernel_size * kernel_size
        std = (2.0 / fan_in) ** 0.5                 # kaiming_normal_ (fan_in)
        self.weight = (std * jax.random.normal(
            key, (planes, inplanes, kernel_size, kernel_size))).astype(dtype)
        # BatchNorm2d params as set by _init_weight (weight=1, bias=0) and
        # default running stats (mean=0, var=1).
        self.gamma = jnp.ones((planes,), dtype)
        self.beta = jnp.zeros((planes,), dtype)
        self.running_mean = jnp.zeros((planes,), dtype)
        self.running_var = jnp.ones((planes,), dtype)
        self.padding = padding
        self.dilation = dilation
        self.eps = eps
        self.compute_dtype = compute_dtype

    def __call__(self, x):
        return aspp_forward(x, self.weight, self.gamma, self.beta,
                            self.running_mean, self.running_var,
                            padding=self.padding, dilation=self.dilation,
                            eps=self.eps, compute_dtype=self.compute_dtype)


def _reference(x, mod):
    """Plain-JAX reference with the same compute-dtype rounding as the kernel."""
    cdt = mod.compute_dtype
    xc = x.astype(cdt).astype(jnp.float32)
    wc = mod.weight.astype(cdt).astype(jnp.float32)
    y = jax.lax.conv_general_dilated(
        xc, wc, window_strides=(1, 1),
        padding=((mod.padding, mod.padding), (mod.padding, mod.padding)),
        rhs_dilation=(mod.dilation, mod.dilation),
        dimension_numbers=("NCHW", "OIHW", "NCHW"),
        precision=jax.lax.Precision.HIGHEST)
    scale = (mod.gamma.astype(jnp.float32)
             / jnp.sqrt(mod.running_var.astype(jnp.float32) + mod.eps))
    shift = mod.beta.astype(jnp.float32) - mod.running_mean.astype(jnp.float32) * scale
    y = y * scale.reshape(1, -1, 1, 1) + shift.reshape(1, -1, 1, 1)
    return jnp.maximum(y, 0.0).astype(x.dtype)


def _check(out, ref, atol=5e-3, rtol=5e-3):
    assert out.shape == ref.shape, (out.shape, ref.shape)
    assert jnp.allclose(out, ref, atol=atol, rtol=rtol), \
        float(jnp.max(jnp.abs(out - ref)))


if __name__ == "__main__":
    key = jax.random.PRNGKey(0)
    k_x, k_w1, k_w2, k_x3, k_w3 = jax.random.split(key, 5)

    # Small NCHW input consistent with the module: batch=2, channels=4, 16x16.
    N, Cin, H, W = 2, 4, 16, 16
    planes = 8
    x = jax.random.normal(k_x, (N, Cin, H, W), dtype=jnp.float32)

    # 3x3 atrous branch (kernel=3, padding=dilation=2), as in DeepLab ASPP.
    mod3 = ASPPModule(Cin, planes, kernel_size=3, padding=2, dilation=2, key=k_w1)
    out3 = jax.block_until_ready(mod3(x))
    _check(out3, _reference(x, mod3))

    # 1x1 branch (kernel=1, padding=0, dilation=1).
    mod1 = ASPPModule(Cin, planes, kernel_size=1, padding=0, dilation=1, key=k_w2)
    out1 = jax.block_until_ready(mod1(x))
    _check(out1, _reference(x, mod1))

    # batch=1 / wider planes: exercises the Cout-split (megacore) grid path.
    x3 = jax.random.normal(k_x3, (1, 8, 16, 16), dtype=jnp.float32)
    mod4 = ASPPModule(8, 256, kernel_size=3, padding=4, dilation=4, key=k_w3)
    out4 = jax.block_until_ready(mod4(x3))
    _check(out4, _reference(x3, mod4))

    print("KERNEL_OK")
</pallas_src>

<mosaic_0001>
module attributes {stable_mosaic.version = 11 : i64} {
  func.func @_aspp_kernel(%arg0: i32, %arg1: i32, %arg2: i32, %arg3: memref<1x16x16x4xbf16, #tpu.memory_space<vmem>>, %arg4: memref<3x3x4x128xbf16, #tpu.memory_space<vmem>>, %arg5: memref<1x128xf32, #tpu.memory_space<vmem>>, %arg6: memref<1x128xf32, #tpu.memory_space<vmem>>, %arg7: memref<1x16x16x128xf32, #tpu.memory_space<vmem>>, %arg8: memref<3x16x16x128xf32, #tpu.memory_space<vmem>>, %arg9: memref<16x16x128xf32, #tpu.memory_space<vmem>>) attributes {dimension_semantics = [#tpu.dimension_semantics<parallel>, #tpu.dimension_semantics<parallel>, #tpu.dimension_semantics<arbitrary>], iteration_bounds = array<i64: 2, 1, 1>, scalar_prefetch = 0 : i64, scratch_operands = 2 : i64, tpu.core_type = #tpu.core_type<tc>, window_params = [{transform_indices = @transform_0, window_bounds = array<i64: 1, 16, 16, 4>}, {transform_indices = @transform_1, window_bounds = array<i64: 3, 3, 4, 128>}, {transform_indices = @transform_2, window_bounds = array<i64: 1, 128>}, {transform_indices = @transform_3, window_bounds = array<i64: 1, 128>}, {transform_indices = @transform_4, window_bounds = array<i64: 1, 16, 16, 128>}]} {
    %c0_i32 = arith.constant 0 : i32
    %0 = arith.cmpi eq, %arg2, %c0_i32 : i32
    %1 = arith.extui %0 : i1 to i32
    %c0_i32_0 = arith.constant 0 : i32
    %2 = arith.cmpi ne, %1, %c0_i32_0 : i32
    scf.if %2 {
      %cst_128 = arith.constant 0.000000e+00 : f32
      %105 = vector.broadcast %cst_128 : f32 to vector<3x16x16x128xf32>
      %c0_129 = arith.constant 0 : index
      %c0_130 = arith.constant 0 : index
      %c0_131 = arith.constant 0 : index
      %c0_132 = arith.constant 0 : index
      %106 = vector.load %arg8[%c0_129, %c0_130, %c0_131, %c0_132] : memref<3x16x16x128xf32, #tpu.memory_space<vmem>>, vector<3x16x16x128xf32>
      tpu.vector_store %arg8[%c0_129, %c0_130, %c0_131, %c0_132], %105 {strides = array<i32>} : memref<3x16x16x128xf32, #tpu.memory_space<vmem>>, vector<3x16x16x128xf32>,
    } else {
    }
    %c0 = arith.constant 0 : index
    %c0_1 = arith.constant 0 : index
    %c0_2 = arith.constant 0 : index
    %c0_3 = arith.constant 0 : index
    %3 = vector.load %arg3[%c0, %c0_1, %c0_2, %c0_3] : memref<1x16x16x4xbf16, #tpu.memory_space<vmem>>, vector<1x14x16x4xbf16>
    %4 = vector.shape_cast %3 : vector<1x14x16x4xbf16> to vector<14x16x4xbf16>
    %5 = vector.shape_cast %4 : vector<14x16x4xbf16> to vector<224x4xbf16>
    %c0_4 = arith.constant 0 : index
    %c0_5 = arith.constant 0 : index
    %c0_6 = arith.constant 0 : index
    %c0_7 = arith.constant 0 : index
    %6 = vector.load %arg4[%c0_4, %c0_5, %c0_6, %c0_7] : memref<3x3x4x128xbf16, #tpu.memory_space<vmem>>, vector<1x1x4x128xbf16>
    %7 = vector.shape_cast %6 : vector<1x1x4x128xbf16> to vector<4x128xbf16>
    %cst = arith.constant dense<0.000000e+00> : vector<224x128xf32>
    %8 = tpu.matmul %5, %7, %cst {dimension_numbers = #tpu.dot_dimension_numbers<[1], [0], [0], [1], [0, 0, 1, 1], [], []>} : vector<224x4xbf16>, vector<4x128xbf16>, vector<224x128xf32> -> vector<224x128xf32>
    %c0_8 = arith.constant 0 : index
    %c2 = arith.constant 2 : index
    %c0_9 = arith.constant 0 : index
    %c0_10 = arith.constant 0 : index
    %9 = vector.load %arg8[%c0_8, %c2, %c0_9, %c0_10] : memref<3x16x16x128xf32, #tpu.memory_space<vmem>>, vector<1x14x16x128xf32>
    %10 = vector.shape_cast %9 : vector<1x14x16x128xf32> to vector<14x16x128xf32>
    %11 = vector.shape_cast %8 : vector<224x128xf32> to vector<14x16x128xf32>
    %12 = arith.addf %10, %11 : vector<14x16x128xf32>
    %c0_11 = arith.constant 0 : index
    %c2_12 = arith.constant 2 : index
    %c0_13 = arith.constant 0 : index
    %c0_14 = arith.constant 0 : index
    %13 = vector.load %arg8[%c0_11, %c2_12, %c0_13, %c0_14] : memref<3x16x16x128xf32, #tpu.memory_space<vmem>>, vector<1x14x16x128xf32>
    %14 = vector.shape_cast %13 : vector<1x14x16x128xf32> to vector<14x16x128xf32>
    %15 = vector.shape_cast %12 : vector<14x16x128xf32> to vector<1x14x16x128xf32>
    tpu.vector_store %arg8[%c0_11, %c2_12, %c0_13, %c0_14], %15 {strides = array<i32>} : memref<3x16x16x128xf32, #tpu.memory_space<vmem>>, vector<1x14x16x128xf32>,
    %c0_15 = arith.constant 0 : index
    %c1 = arith.constant 1 : index
    %c0_16 = arith.constant 0 : index
    %c0_17 = arith.constant 0 : index
    %16 = vector.load %arg4[%c0_15, %c1, %c0_16, %c0_17] : memref<3x3x4x128xbf16, #tpu.memory_space<vmem>>, vector<1x1x4x128xbf16>
    %17 = vector.shape_cast %16 : vector<1x1x4x128xbf16> to vector<4x128xbf16>
    %cst_18 = arith.constant dense<0.000000e+00> : vector<224x128xf32>
    %18 = tpu.matmul %5, %17, %cst_18 {dimension_numbers = #tpu.dot_dimension_numbers<[1], [0], [0], [1], [0, 0, 1, 1], [], []>} : vector<224x4xbf16>, vector<4x128xbf16>, vector<224x128xf32> -> vector<224x128xf32>
    %c1_19 = arith.constant 1 : index
    %c2_20 = arith.constant 2 : index
    %c0_21 = arith.constant 0 : index
    %c0_22 = arith.constant 0 : index
    %19 = vector.load %arg8[%c1_19, %c2_20, %c0_21, %c0_22] : memref<3x16x16x128xf32, #tpu.memory_space<vmem>>, vector<1x14x16x128xf32>
    %20 = vector.shape_cast %19 : vector<1x14x16x128xf32> to vector<14x16x128xf32>
    %21 = vector.shape_cast %18 : vector<224x128xf32> to vector<14x16x128xf32>
    %22 = arith.addf %20, %21 : vector<14x16x128xf32>
    %c1_23 = arith.constant 1 : index
    %c2_24 = arith.constant 2 : index
    %c0_25 = arith.constant 0 : index
    %c0_26 = arith.constant 0 : index
    %23 = vector.load %arg8[%c1_23, %c2_24, %c0_25, %c0_26] : memref<3x16x16x128xf32, #tpu.memory_space<vmem>>, vector<1x14x16x128xf32>
    %24 = vector.shape_cast %23 : vector<1x14x16x128xf32> to vector<14x16x128xf32>
    %25 = vector.shape_cast %22 : vector<14x16x128xf32> to vector<1x14x16x128xf32>
    tpu.vector_store %arg8[%c1_23, %c2_24, %c0_25, %c0_26], %25 {strides = array<i32>} : memref<3x16x16x128xf32, #tpu.memory_space<vmem>>, vector<1x14x16x128xf32>,
    %c0_27 = arith.constant 0 : index
    %c2_28 = arith.constant 2 : index
    %c0_29 = arith.constant 0 : index
    %c0_30 = arith.constant 0 : index
    %26 = vector.load %arg4[%c0_27, %c2_28, %c0_29, %c0_30] : memref<3x3x4x128xbf16, #tpu.memory_space<vmem>>, vector<1x1x4x128xbf16>
    %27 = vector.shape_cast %26 : vector<1x1x4x128xbf16> to vector<4x128xbf16>
    %cst_31 = arith.constant dense<0.000000e+00> : vector<224x128xf32>
    %28 = tpu.matmul %5, %27, %cst_31 {dimension_numbers = #tpu.dot_dimension_numbers<[1], [0], [0], [1], [0, 0, 1, 1], [], []>} : vector<224x4xbf16>, vector<4x128xbf16>, vector<224x128xf32> -> vector<224x128xf32>
    %c2_32 = arith.constant 2 : index
    %c2_33 = arith.constant 2 : index
    %c0_34 = arith.constant 0 : index
    %c0_35 = arith.constant 0 : index
    %29 = vector.load %arg8[%c2_32, %c2_33, %c0_34, %c0_35] : memref<3x16x16x128xf32, #tpu.memory_space<vmem>>, vector<1x14x16x128xf32>
    %30 = vector.shape_cast %29 : vector<1x14x16x128xf32> to vector<14x16x128xf32>
    %31 = vector.shape_cast %28 : vector<224x128xf32> to vector<14x16x128xf32>
    %32 = arith.addf %30, %31 : vector<14x16x128xf32>
    %c2_36 = arith.constant 2 : index
    %c2_37 = arith.constant 2 : index
    %c0_38 = arith.constant 0 : index
    %c0_39 = arith.constant 0 : index
    %33 = vector.load %arg8[%c2_36, %c2_37, %c0_38, %c0_39] : memref<3x16x16x128xf32, #tpu.memory_space<vmem>>, vector<1x14x16x128xf32>
    %34 = vector.shape_cast %33 : vector<1x14x16x128xf32> to vector<14x16x128xf32>
    %35 = vector.shape_cast %32 : vector<14x16x128xf32> to vector<1x14x16x128xf32>
    tpu.vector_store %arg8[%c2_36, %c2_37, %c0_38, %c0_39], %35 {strides = array<i32>} : memref<3x16x16x128xf32, #tpu.memory_space<vmem>>, vector<1x14x16x128xf32>,
    %c0_40 = arith.constant 0 : index
    %c0_41 = arith.constant 0 : index
    %c0_42 = arith.constant 0 : index
    %c0_43 = arith.constant 0 : index
    %36 = vector.load %arg3[%c0_40, %c0_41, %c0_42, %c0_43] : memref<1x16x16x4xbf16, #tpu.memory_space<vmem>>, vector<1x16x16x4xbf16>
    %37 = vector.shape_cast %36 : vector<1x16x16x4xbf16> to vector<16x16x4xbf16>
    %38 = vector.shape_cast %37 : vector<16x16x4xbf16> to vector<256x4xbf16>
    %c1_44 = arith.constant 1 : index
    %c0_45 = arith.constant 0 : index
    %c0_46 = arith.constant 0 : index
    %c0_47 = arith.constant 0 : index
    %39 = vector.load %arg4[%c1_44, %c0_45, %c0_46, %c0_47] : memref<3x3x4x128xbf16, #tpu.memory_space<vmem>>, vector<1x1x4x128xbf16>
    %40 = vector.shape_cast %39 : vector<1x1x4x128xbf16> to vector<4x128xbf16>
    %cst_48 = arith.constant dense<0.000000e+00> : vector<256x128xf32>
    %41 = tpu.matmul %38, %40, %cst_48 {dimension_numbers = #tpu.dot_dimension_numbers<[1], [0], [0], [1], [0, 0, 1, 1], [], []>} : vector<256x4xbf16>, vector<4x128xbf16>, vector<256x128xf32> -> vector<256x128xf32>
    %c0_49 = arith.constant 0 : index
    %c0_50 = arith.constant 0 : index
    %c0_51 = arith.constant 0 : index
    %c0_52 = arith.constant 0 : index
    %42 = vector.load %arg8[%c0_49, %c0_50, %c0_51, %c0_52] : memref<3x16x16x128xf32, #tpu.memory_space<vmem>>, vector<1x16x16x128xf32>
    %43 = vector.shape_cast %42 : vector<1x16x16x128xf32> to vector<16x16x128xf32>
    %44 = vector.shape_cast %41 : vector<256x128xf32> to vector<16x16x128xf32>
    %45 = arith.addf %43, %44 : vector<16x16x128xf32>
    %c0_53 = arith.constant 0 : index
    %c0_54 = arith.constant 0 : index
    %c0_55 = arith.constant 0 : index
    %c0_56 = arith.constant 0 : index
    %46 = vector.load %arg8[%c0_53, %c0_54, %c0_55, %c0_56] : memref<3x16x16x128xf32, #tpu.memory_space<vmem>>, vector<1x16x16x128xf32>
    %47 = vector.shape_cast %46 : vector<1x16x16x128xf32> to vector<16x16x128xf32>
    %48 = vector.shape_cast %45 : vector<16x16x128xf32> to vector<1x16x16x128xf32>
    tpu.vector_store %arg8[%c0_53, %c0_54, %c0_55, %c0_56], %48 {strides = array<i32>} : memref<3x16x16x128xf32, #tpu.memory_space<vmem>>, vector<1x16x16x128xf32>,
    %c1_57 = arith.constant 1 : index
    %c1_58 = arith.constant 1 : index
    %c0_59 = arith.constant 0 : index
    %c0_60 = arith.constant 0 : index
    %49 = vector.load %arg4[%c1_57, %c1_58, %c0_59, %c0_60] : memref<3x3x4x128xbf16, #tpu.memory_space<vmem>>, vector<1x1x4x128xbf16>
    %50 = vector.shape_cast %49 : vector<1x1x4x128xbf16> to vector<4x128xbf16>
    %cst_61 = arith.constant dense<0.000000e+00> : vector<256x128xf32>
    %51 = tpu.matmul %38, %50, %cst_61 {dimension_numbers = #tpu.dot_dimension_numbers<[1], [0], [0], [1], [0, 0, 1, 1], [], []>} : vector<256x4xbf16>, vector<4x128xbf16>, vector<256x128xf32> -> vector<256x128xf32>
    %c1_62 = arith.constant 1 : index
    %c0_63 = arith.constant 0 : index
    %c0_64 = arith.constant 0 : index
    %c0_65 = arith.constant 0 : index
    %52 = vector.load %arg8[%c1_62, %c0_63, %c0_64, %c0_65] : memref<3x16x16x128xf32, #tpu.memory_space<vmem>>, vector<1x16x16x128xf32>
    %53 = vector.shape_cast %52 : vector<1x16x16x128xf32> to vector<16x16x128xf32>
    %54 = vector.shape_cast %51 : vector<256x128xf32> to vector<16x16x128xf32>
    %55 = arith.addf %53, %54 : vector<16x16x128xf32>
    %c1_66 = arith.constant 1 : index
    %c0_67 = arith.constant 0 : index
    %c0_68 = arith.constant 0 : index
    %c0_69 = arith.constant 0 : index
    %56 = vector.load %arg8[%c1_66, %c0_67, %c0_68, %c0_69] : memref<3x16x16x128xf32, #tpu.memory_space<vmem>>, vector<1x16x16x128xf32>
    %57 = vector.shape_cast %56 : vector<1x16x16x128xf32> to vector<16x16x128xf32>
    %58 = vector.shape_cast %55 : vector<16x16x128xf32> to vector<1x16x16x128xf32>
    tpu.vector_store %arg8[%c1_66, %c0_67, %c0_68, %c0_69], %58 {strides = array<i32>} : memref<3x16x16x128xf32, #tpu.memory_space<vmem>>, vector<1x16x16x128xf32>,
    %c1_70 = arith.constant 1 : index
    %c2_71 = arith.constant 2 : index
    %c0_72 = arith.constant 0 : index
    %c0_73 = arith.constant 0 : index
    %59 = vector.load %arg4[%c1_70, %c2_71, %c0_72, %c0_73] : memref<3x3x4x128xbf16, #tpu.memory_space<vmem>>, vector<1x1x4x128xbf16>
    %60 = vector.shape_cast %59 : vector<1x1x4x128xbf16> to vector<4x128xbf16>
    %cst_74 = arith.constant dense<0.000000e+00> : vector<256x128xf32>
    %61 = tpu.matmul %38, %60, %cst_74 {dimension_numbers = #tpu.dot_dimension_numbers<[1], [0], [0], [1], [0, 0, 1, 1], [], []>} : vector<256x4xbf16>, vector<4x128xbf16>, vector<256x128xf32> -> vector<256x128xf32>
    %c2_75 = arith.constant 2 : index
    %c0_76 = arith.constant 0 : index
    %c0_77 = arith.constant 0 : index
    %c0_78 = arith.constant 0 : index
    %62 = vector.load %arg8[%c2_75, %c0_76, %c0_77, %c0_78] : memref<3x16x16x128xf32, #tpu.memory_space<vmem>>, vector<1x16x16x128xf32>
    %63 = vector.shape_cast %62 : vector<1x16x16x128xf32> to vector<16x16x128xf32>
    %64 = vector.shape_cast %61 : vector<256x128xf32> to vector<16x16x128xf32>
    %65 = arith.addf %63, %64 : vector<16x16x128xf32>
    %c2_79 = arith.constant 2 : index
    %c0_80 = arith.constant 0 : index
    %c0_81 = arith.constant 0 : index
    %c0_82 = arith.constant 0 : index
    %66 = vector.load %arg8[%c2_79, %c0_80, %c0_81, %c0_82] : memref<3x16x16x128xf32, #tpu.memory_space<vmem>>, vector<1x16x16x128xf32>
    %67 = vector.shape_cast %66 : vector<1x16x16x128xf32> to vector<16x16x128xf32>
    %68 = vector.shape_cast %65 : vector<16x16x128xf32> to vector<1x16x16x128xf32>
    tpu.vector_store %arg8[%c2_79, %c0_80, %c0_81, %c0_82], %68 {strides = array<i32>} : memref<3x16x16x128xf32, #tpu.memory_space<vmem>>, vector<1x16x16x128xf32>,
    %c0_83 = arith.constant 0 : index
    %c2_84 = arith.constant 2 : index
    %c0_85 = arith.constant 0 : index
    %c0_86 = arith.constant 0 : index
    %69 = vector.load %arg3[%c0_83, %c2_84, %c0_85, %c0_86] : memref<1x16x16x4xbf16, #tpu.memory_space<vmem>>, vector<1x14x16x4xbf16>
    %70 = vector.shape_cast %69 : vector<1x14x16x4xbf16> to vector<14x16x4xbf16>
    %71 = vector.shape_cast %70 : vector<14x16x4xbf16> to vector<224x4xbf16>
    %c2_87 = arith.constant 2 : index
    %c0_88 = arith.constant 0 : index
    %c0_89 = arith.constant 0 : index
    %c0_90 = arith.constant 0 : index
    %72 = vector.load %arg4[%c2_87, %c0_88, %c0_89, %c0_90] : memref<3x3x4x128xbf16, #tpu.memory_space<vmem>>, vector<1x1x4x128xbf16>
    %73 = vector.shape_cast %72 : vector<1x1x4x128xbf16> to vector<4x128xbf16>
    %cst_91 = arith.constant dense<0.000000e+00> : vector<224x128xf32>
    %74 = tpu.matmul %71, %73, %cst_91 {dimension_numbers = #tpu.dot_dimension_numbers<[1], [0], [0], [1], [0, 0, 1, 1], [], []>} : vector<224x4xbf16>, vector<4x128xbf16>, vector<224x128xf32> -> vector<224x128xf32>
    %c0_92 = arith.constant 0 : index
    %c0_93 = arith.constant 0 : index
    %c0_94 = arith.constant 0 : index
    %c0_95 = arith.constant 0 : index
    %75 = vector.load %arg8[%c0_92, %c0_93, %c0_94, %c0_95] : memref<3x16x16x128xf32, #tpu.memory_space<vmem>>, vector<1x14x16x128xf32>
    %76 = vector.shape_cast %75 : vector<1x14x16x128xf32> to vector<14x16x128xf32>
    %77 = vector.shape_cast %74 : vector<224x128xf32> to vector<14x16x128xf32>
    %78 = arith.addf %76, %77 : vector<14x16x128xf32>
    %c0_96 = arith.constant 0 : index
    %c0_97 = arith.constant 0 : index
    %c0_98 = arith.constant 0 : index
    %c0_99 = arith.constant 0 : index
    %79 = vector.load %arg8[%c0_96, %c0_97, %c0_98, %c0_99] : memref<3x16x16x128xf32, #tpu.memory_space<vmem>>, vector<1x14x16x128xf32>
    %80 = vector.shape_cast %79 : vector<1x14x16x128xf32> to vector<14x16x128xf32>
    %81 = vector.shape_cast %78 : vector<14x16x128xf32> to vector<1x14x16x128xf32>
    tpu.vector_store %arg8[%c0_96, %c0_97, %c0_98, %c0_99], %81 {strides = array<i32>} : memref<3x16x16x128xf32, #tpu.memory_space<vmem>>, vector<1x14x16x128xf32>,
    %c2_100 = arith.constant 2 : index
    %c1_101 = arith.constant 1 : index
    %c0_102 = arith.constant 0 : index
    %c0_103 = arith.constant 0 : index
    %82 = vector.load %arg4[%c2_100, %c1_101, %c0_102, %c0_103] : memref<3x3x4x128xbf16, #tpu.memory_space<vmem>>, vector<1x1x4x128xbf16>
    %83 = vector.shape_cast %82 : vector<1x1x4x128xbf16> to vector<4x128xbf16>
    %cst_104 = arith.constant dense<0.000000e+00> : vector<224x128xf32>
    %84 = tpu.matmul %71, %83, %cst_104 {dimension_numbers = #tpu.dot_dimension_numbers<[1], [0], [0], [1], [0, 0, 1, 1], [], []>} : vector<224x4xbf16>, vector<4x128xbf16>, vector<224x128xf32> -> vector<224x128xf32>
    %c1_105 = arith.constant 1 : index
    %c0_106 = arith.constant 0 : index
    %c0_107 = arith.constant 0 : index
    %c0_108 = arith.constant 0 : index
    %85 = vector.load %arg8[%c1_105, %c0_106, %c0_107, %c0_108] : memref<3x16x16x128xf32, #tpu.memory_space<vmem>>, vector<1x14x16x128xf32>
    %86 = vector.shape_cast %85 : vector<1x14x16x128xf32> to vector<14x16x128xf32>
    %87 = vector.shape_cast %84 : vector<224x128xf32> to vector<14x16x128xf32>
    %88 = arith.addf %86, %87 : vector<14x16x128xf32>
    %c1_109 = arith.constant 1 : index
    %c0_110 = arith.constant 0 : index
    %c0_111 = arith.constant 0 : index
    %c0_112 = arith.constant 0 : index
    %89 = vector.load %arg8[%c1_109, %c0_110, %c0_111, %c0_112] : memref<3x16x16x128xf32, #tpu.memory_space<vmem>>, vector<1x14x16x128xf32>
    %90 = vector.shape_cast %89 : vector<1x14x16x128xf32> to vector<14x16x128xf32>
    %91 = vector.shape_cast %88 : vector<14x16x128xf32> to vector<1x14x16x128xf32>
    tpu.vector_store %arg8[%c1_109, %c0_110, %c0_111, %c0_112], %91 {strides = array<i32>} : memref<3x16x16x128xf32, #tpu.memory_space<vmem>>, vector<1x14x16x128xf32>,
    %c2_113 = arith.constant 2 : index
    %c2_114 = arith.constant 2 : index
    %c0_115 = arith.constant 0 : index
    %c0_116 = arith.constant 0 : index
    %92 = vector.load %arg4[%c2_113, %c2_114, %c0_115, %c0_116] : memref<3x3x4x128xbf16, #tpu.memory_space<vmem>>, vector<1x1x4x128xbf16>
    %93 = vector.shape_cast %92 : vector<1x1x4x128xbf16> to vector<4x128xbf16>
    %cst_117 = arith.constant dense<0.000000e+00> : vector<224x128xf32>
    %94 = tpu.matmul %71, %93, %cst_117 {dimension_numbers = #tpu.dot_dimension_numbers<[1], [0], [0], [1], [0, 0, 1, 1], [], []>} : vector<224x4xbf16>, vector<4x128xbf16>, vector<224x128xf32> -> vector<224x128xf32>
    %c2_118 = arith.constant 2 : index
    %c0_119 = arith.constant 0 : index
    %c0_120 = arith.constant 0 : index
    %c0_121 = arith.constant 0 : index
    %95 = vector.load %arg8[%c2_118, %c0_119, %c0_120, %c0_121] : memref<3x16x16x128xf32, #tpu.memory_space<vmem>>, vector<1x14x16x128xf32>
    %96 = vector.shape_cast %95 : vector<1x14x16x128xf32> to vector<14x16x128xf32>
    %97 = vector.shape_cast %94 : vector<224x128xf32> to vector<14x16x128xf32>
    %98 = arith.addf %96, %97 : vector<14x16x128xf32>
    %c2_122 = arith.constant 2 : index
    %c0_123 = arith.constant 0 : index
    %c0_124 = arith.constant 0 : index
    %c0_125 = arith.constant 0 : index
    %99 = vector.load %arg8[%c2_122, %c0_123, %c0_124, %c0_125] : memref<3x16x16x128xf32, #tpu.memory_space<vmem>>, vector<1x14x16x128xf32>
    %100 = vector.shape_cast %99 : vector<1x14x16x128xf32> to vector<14x16x128xf32>
    %101 = vector.shape_cast %98 : vector<14x16x128xf32> to vector<1x14x16x128xf32>
    tpu.vector_store %arg8[%c2_122, %c0_123, %c0_124, %c0_125], %101 {strides = array<i32>} : memref<3x16x16x128xf32, #tpu.memory_space<vmem>>, vector<1x14x16x128xf32>,
    %c0_i32_126 = arith.constant 0 : i32
    %102 = arith.cmpi eq, %arg2, %c0_i32_126 : i32
    %103 = arith.extui %102 : i1 to i32
    %c0_i32_127 = arith.constant 0 : i32
    %104 = arith.cmpi ne, %103, %c0_i32_127 : i32
    scf.if %104 {
      %cst_128 = arith.constant 0.000000e+00 : f32
      %105 = vector.broadcast %cst_128 : f32 to vector<16x16x128xf32>
      %c0_129 = arith.constant 0 : index
      %c0_130 = arith.constant 0 : index
      %c0_131 = arith.constant 0 : index
      %106 = vector.load %arg9[%c0_129, %c0_130, %c0_131] : memref<16x16x128xf32, #tpu.memory_space<vmem>>, vector<16x16x128xf32>
      tpu.vector_store %arg9[%c0_129, %c0_130, %c0_131], %105 {strides = array<i32>} : memref<16x16x128xf32, #tpu.memory_space<vmem>>, vector<16x16x128xf32>,
      %c0_132 = arith.constant 0 : index
      %c2_133 = arith.constant 2 : index
      %c0_134 = arith.constant 0 : index
      %107 = vector.load %arg9[%c0_132, %c2_133, %c0_134] : memref<16x16x128xf32, #tpu.memory_space<vmem>>, vector<16x14x128xf32>
      %c0_135 = arith.constant 0 : index
      %c0_136 = arith.constant 0 : index
      %c0_137 = arith.constant 0 : index
      %c0_138 = arith.constant 0 : index
      %108 = vector.load %arg8[%c0_135, %c0_136, %c0_137, %c0_138] : memref<3x16x16x128xf32, #tpu.memory_space<vmem>>, vector<1x16x14x128xf32>
      %109 = vector.shape_cast %108 : vector<1x16x14x128xf32> to vector<16x14x128xf32>
      %110 = arith.addf %107, %109 : vector<16x14x128xf32>
      %c0_139 = arith.constant 0 : index
      %c2_140 = arith.constant 2 : index
      %c0_141 = arith.constant 0 : index
      %111 = vector.load %arg9[%c0_139, %c2_140, %c0_141] : memref<16x16x128xf32, #tpu.memory_space<vmem>>, vector<16x14x128xf32>
      tpu.vector_store %arg9[%c0_139, %c2_140, %c0_141], %110 {strides = array<i32>} : memref<16x16x128xf32, #tpu.memory_space<vmem>>, vector<16x14x128xf32>,
      %c0_142 = arith.constant 0 : index
      %c0_143 = arith.constant 0 : index
      %c0_144 = arith.constant 0 : index
      %112 = vector.load %arg9[%c0_142, %c0_143, %c0_144] : memref<16x16x128xf32, #tpu.memory_space<vmem>>, vector<16x16x128xf32>
      %c1_145 = arith.constant 1 : index
      %c0_146 = arith.constant 0 : index
      %c0_147 = arith.constant 0 : index
      %c0_148 = arith.constant 0 : index
      %113 = vector.load %arg8[%c1_145, %c0_146, %c0_147, %c0_148] : memref<3x16x16x128xf32, #tpu.memory_space<vmem>>, vector<1x16x16x128xf32>
      %114 = vector.shape_cast %113 : vector<1x16x16x128xf32> to vector<16x16x128xf32>
      %115 = arith.addf %112, %114 : vector<16x16x128xf32>
      %c0_149 = arith.constant 0 : index
      %c0_150 = arith.constant 0 : index
      %c0_151 = arith.constant 0 : index
      %116 = vector.load %arg9[%c0_149, %c0_150, %c0_151] : memref<16x16x128xf32, #tpu.memory_space<vmem>>, vector<16x16x128xf32>
      tpu.vector_store %arg9[%c0_149, %c0_150, %c0_151], %115 {strides = array<i32>} : memref<16x16x128xf32, #tpu.memory_space<vmem>>, vector<16x16x128xf32>,
      %c0_152 = arith.constant 0 : index
      %c0_153 = arith.constant 0 : index
      %c0_154 = arith.constant 0 : index
      %117 = vector.load %arg9[%c0_152, %c0_153, %c0_154] : memref<16x16x128xf32, #tpu.memory_space<vmem>>, vector<16x14x128xf32>
      %c2_155 = arith.constant 2 : index
      %c0_156 = arith.constant 0 : index
      %c2_157 = arith.constant 2 : index
      %c0_158 = arith.constant 0 : index
      %118 = vector.load %arg8[%c2_155, %c0_156, %c2_157, %c0_158] : memref<3x16x16x128xf32, #tpu.memory_space<vmem>>, vector<1x16x14x128xf32>
      %119 = vector.shape_cast %118 : vector<1x16x14x128xf32> to vector<16x14x128xf32>
      %120 = arith.addf %117, %119 : vector<16x14x128xf32>
      %c0_159 = arith.constant 0 : index
      %c0_160 = arith.constant 0 : index
      %c0_161 = arith.constant 0 : index
      %121 = vector.load %arg9[%c0_159, %c0_160, %c0_161] : memref<16x16x128xf32, #tpu.memory_space<vmem>>, vector<16x14x128xf32>
      tpu.vector_store %arg9[%c0_159, %c0_160, %c0_161], %120 {strides = array<i32>} : memref<16x16x128xf32, #tpu.memory_space<vmem>>, vector<16x14x128xf32>,
      %c0_162 = arith.constant 0 : index
      %c0_163 = arith.constant 0 : index
      %122 = vector.load %arg5[%c0_162, %c0_163] : memref<1x128xf32, #tpu.memory_space<vmem>>, vector<1x128xf32>
      %123 = vector.shape_cast %122 : vector<1x128xf32> to vector<1x1x128xf32>
      %c0_164 = arith.constant 0 : index
      %c0_165 = arith.constant 0 : index
      %124 = vector.load %arg6[%c0_164, %c0_165] : memref<1x128xf32, #tpu.memory_space<vmem>>, vector<1x128xf32>
      %125 = vector.shape_cast %124 : vector<1x128xf32> to vector<1x1x128xf32>
      %c0_166 = arith.constant 0 : index
      %c0_167 = arith.constant 0 : index
      %c0_168 = arith.constant 0 : index
      %126 = vector.load %arg9[%c0_166, %c0_167, %c0_168] : memref<16x16x128xf32, #tpu.memory_space<vmem>>, vector<16x16x128xf32>
      %127 = vector.broadcast %123 : vector<1x1x128xf32> to vector<16x16x128xf32>
      %128 = arith.mulf %126, %127 : vector<16x16x128xf32>
      %129 = vector.broadcast %125 : vector<1x1x128xf32> to vector<16x16x128xf32>
      %130 = arith.addf %128, %129 : vector<16x16x128xf32>
      %cst_169 = arith.constant 0.000000e+00 : f32
      %131 = vector.broadcast %cst_169 : f32 to vector<16x16x128xf32>
      %132 = arith.maximumf %130, %131 : vector<16x16x128xf32>
      %c0_170 = arith.constant 0 : index
      %c0_171 = arith.constant 0 : index
      %c0_172 = arith.constant 0 : index
      %c0_173 = arith.constant 0 : index
      %133 = vector.load %arg7[%c0_170, %c0_171, %c0_172, %c0_173] : memref<1x16x16x128xf32, #tpu.memory_space<vmem>>, vector<1x16x16x128xf32>
      %134 = vector.shape_cast %133 : vector<1x16x16x128xf32> to vector<16x16x128xf32>
      %135 = vector.shape_cast %132 : vector<16x16x128xf32> to vector<1x16x16x128xf32>
      tpu.vector_store %arg7[%c0_170, %c0_171, %c0_172, %c0_173], %135 {strides = array<i32>} : memref<1x16x16x128xf32, #tpu.memory_space<vmem>>, vector<1x16x16x128xf32>,
    } else {
    }
    return
  }
  func.func @transform_0(%arg0: i32, %arg1: i32, %arg2: i32) -> (i32, i32, i32, i32) {
    %c0_i32 = arith.constant 0 : i32
    %c0_i32_0 = arith.constant 0 : i32
    %c0_i32_1 = arith.constant 0 : i32
    return %arg0, %c0_i32, %c0_i32_0, %arg2 : i32, i32, i32, i32
  }
  func.func @transform_1(%arg0: i32, %arg1: i32, %arg2: i32) -> (i32, i32, i32, i32) {
    %c0_i32 = arith.constant 0 : i32
    %c0_i32_0 = arith.constant 0 : i32
    %c0_i32_1 = arith.constant 0 : i32
    %c0_i32_2 = arith.constant 0 : i32
    return %c0_i32, %c0_i32_0, %c0_i32_1, %arg1 : i32, i32, i32, i32
  }
  func.func @transform_2(%arg0: i32, %arg1: i32, %arg2: i32) -> (i32, i32) {
    %c0_i32 = arith.constant 0 : i32
    %c0_i32_0 = arith.constant 0 : i32
    return %c0_i32, %arg1 : i32, i32
  }
  func.func @transform_3(%arg0: i32, %arg1: i32, %arg2: i32) -> (i32, i32) {
    %c0_i32 = arith.constant 0 : i32
    %c0_i32_0 = arith.constant 0 : i32
    return %c0_i32, %arg1 : i32, i32
  }
  func.func @transform_4(%arg0: i32, %arg1: i32, %arg2: i32) -> (i32, i32, i32, i32) {
    %c0_i32 = arith.constant 0 : i32
    %c0_i32_0 = arith.constant 0 : i32
    %c0_i32_1 = arith.constant 0 : i32
    return %arg0, %c0_i32, %c0_i32_0, %arg1 : i32, i32, i32, i32
  }
}

</mosaic_0001>

<bundles_post_ra>
// kernel: aspp_forward.1
= control target key start
LH: loop header
LB: loop body
LE: loop exit
PB: predicated region body
PF: predicated region fallthrough
CT: control target
= control target key end

     0   :  { %s5027_s15 = smov 0   ;;  %s5029_s16 = smov 0   ;;  %s5525_s0 = inlined_call_operand.vmem [shape: bf16[2,16,16,4], index: 0, kind: input, shape index: {}]   ;;  %s5526_s1 = inlined_call_operand.vmem [shape: bf16[3,3,4,128], index: 1, kind: input, shape index: {}]   ;;  %s5527_s2 = inlined_call_operand.vmem [shape: f32[1,128], index: 2, kind: input, shape index: {}]   ;;  %s5528_s3 = inlined_call_operand.vmem [shape: f32[1,128], index: 3, kind: input, shape index: {}]   ;;  %s5529_s4 = inlined_call_operand.vmem [shape: f32[2,16,16,128], index: 4, kind: output, shape index: {}]  }
   0x1   :  { %s5031_s17 = smov 0  }
   0x2 LB: > { %s33_s18 = sadd.s32 1, %s4995_s16  ;;  %p3745_p0 = scmp.ge.s32.totalorder %s4999_s17, 1  ;;  %s4999_s17 = sphi %s5031_s17, %s14_s17   ;;  %s4995_s16 = sphi %s5029_s16, %s5531_s16   ;;  %s4991_s15 = sphi %s5027_s15, %s5530_s15  }
   0x3   : > { %p35_p1 = scmp.ge.s32.totalorder %s33_s18, 2  ;;  %p213_p2 = scmp.lt.s32.totalorder %s4999_s17, 3 }
   0x5   : > { %s5533_s18 = smov (%p35_p1, %s33_s18), 0  ;;  %p214_p3 = pnand %p3745_p0, %p213_p2 }
   0x6   : > { %v410_v0 = vld [vmem:[%s5526_s1] sm:$0x3] (!%p214_p3)  ;;  %vm524_vm0 = vcmask (!%p214_p3), 1041408   ;;  %p255_p4 = scmp.lt.s32.totalorder (!%p214_p3), %s4991_s15, 1  ;;  %v3778_v2 = vld [vmem:[%s5526_s1 + $0x2] sm:$0x3] (!%p214_p3) }
   0x7   : > { %217 = sbr.rel (%p214_p3) target bundleno = 519 (0x207), region = 36  ;;  %4898 = vmatprep.subr.msk.bf16.mxu1 (!%p214_p3), %vm524_vm0, %v410_v0  ;;  %4897 = vmatprep.subr.msk.bf16.mxu0 (!%p214_p3), %vm524_vm0, %v410_v0  ;;  %v526_v1 = vsel (!%p214_p3), %vm524_vm0, %v410_v0, 0  ;;  %v3793_v3 = vld [vmem:[%s5526_s1 + $0x4] sm:$0x3] (!%p214_p3)  ;;  %vm481_vm1 = vcmask (!%p214_p3), 31744   ;;  %v761_v10 = vsel (!%p214_p3), %vm524_vm0, %v3778_v2, 0 }
   0x8   : > { %4392 = vmatpush3.bf16.msra.mxu1 (!%p214_p3), %v526_v1  ;;  %4110 = vmatpush3.bf16.msra.mxu0 (!%p214_p3), %v526_v1  ;;  %v996_v7 = vsel (!%p214_p3), %vm524_vm0, %v3793_v3, 0  ;;  %v3808_v8 = vld [vmem:[%s5526_s1 + $0x6] sm:$0x3] (!%p214_p3)  ;;  %v3858_v11 = vld [vmem:[%s5526_s1 + $0xa] sm:$0x3] (!%p214_p3)  ;;  %v5001_v34 = vmov (!%p214_p3), 0.0  }
   0x9   : > { %4899 = vmatprep.subr.msk.bf16.mxu1 (!%p214_p3), %vm524_vm0, %v3778_v2  ;;  %4900 = vmatprep.subr.msk.bf16.mxu0 (!%p214_p3), %vm524_vm0, %v3793_v3  ;;  %v1391_v22 = vsel (!%p214_p3), %vm524_vm0, %v3808_v8, 0  ;;  %v3841_v23 = vld [vmem:[%s5526_s1 + $0x8] sm:$0x3] (!%p214_p3)  ;;  %v1916_v24 = vsel (!%p214_p3), %vm524_vm0, %v3858_v11, 0  ;;  %v3903_v25 = vld [vmem:[%s5526_s1 + $0xc] sm:$0x3] (!%p214_p3) }
   0xa   : > { %v1653_v29 = vsel (!%p214_p3), %vm524_vm0, %v3841_v23, 0  ;;  %v5158_v30 = vld [vmem:[%s5526_s1 + $0xe] sm:$0x3] (!%p214_p3)  ;;  %v2320_v33 = vsel (!%p214_p3), %vm524_vm0, %v3903_v25, 0  ;;  %3022 = vst [vmem:[#allocation3] sm:$0xff] (!%p214_p3), %v5001_v34  ;;  %3023 = vst [vmem:[#allocation3 + $0x8] sm:$0xff] (!%p214_p3), %v5001_v34 }
   0xb   : > { %3024 = vst [vmem:[#allocation3 + $0x10] sm:$0xff] (!%p214_p3), %v5001_v34  ;;  %3025 = vst [vmem:[#allocation3 + $0x18] sm:$0xff] (!%p214_p3), %v5001_v34  ;;  %v3947_v35 = vld [vmem:[%s5526_s1 + $0x10] sm:$0x3] (!%p214_p3)  ;;  %v2554_v48 = vsel (!%p214_p3), %vm524_vm0, %v5158_v30, 0 }
   0xc   : > { %3026 = vst [vmem:[#allocation3 + $0x20] sm:$0xff] (!%p214_p3), %v5001_v34  ;;  %3027 = vst [vmem:[#allocation3 + $0x28] sm:$0xff] (!%p214_p3), %v5001_v34  ;;  %v2788_v51 = vsel (!%p214_p3), %vm524_vm0, %v3947_v35, 0 }
   0xd   : > { %3028 = vst [vmem:[#allocation3 + $0x30] sm:$0xff] (!%p214_p3), %v5001_v34  ;;  %3029 = vst [vmem:[#allocation3 + $0x38] sm:$0xff] (!%p214_p3), %v5001_v34 }
   0xe   : > { %s5535_s15 = smov (!%p255_p4, %s4991_s15), 1  ;;  %3030 = vst [vmem:[#allocation3 + $0x40] sm:$0xff] %v5001_v34  ;;  %3031 = vst [vmem:[#allocation3 + $0x48] sm:$0xff] %v5001_v34 }
   0xf   : > { %s3966_s25 = sshll.u32 %s5535_s15, 7  ;;  %3032 = vst [vmem:[#allocation3 + $0x50] sm:$0xff] %v5001_v34  ;;  %3033 = vst [vmem:[#allocation3 + $0x58] sm:$0xff] %v5001_v34  ;;  %s3967_s23 = sshll.u32 %s5535_s15, 8 }
  0x10   : > { %s5065_s28 = scalar_lea.vmem %s5525_s0, %s3966_s25  ;;  %3034 = vst [vmem:[#allocation3 + $0x60] sm:$0xff] %v5001_v34  ;;  %3035 = vst [vmem:[#allocation3 + $0x68] sm:$0xff] %v5001_v34  ;;  %s5405_s15 = scalar_lea.vmem %s5529_s4, %s3967_s23 }
  0x11   : > { %v4932_v4 = vld [vmem:[%s5065_s28] sm:$0xff]   ;;  %v4934_v6 = vld [vmem:[%s5065_s28 + $0x8] sm:$0xff]   ;;  %v4936_v12 = vld [vmem:[%s5065_s28 + $0x10] sm:$0xff]   ;;  %3036 = vst [vmem:[#allocation3 + $0x70] sm:$0xff] %v5001_v34 }
  0x12   : > { %v4933_v5 = vld [vmem:[%s5065_s28 + $0x40] sm:$0xff]   ;;  %4111 = vmatprep.mubr.msk.bf16.mxu0 %vm481_vm1, %v4932_v4  ;;  %v4935_v9 = vld [vmem:[%s5065_s28 + $0x48] sm:$0xff]   ;;  %v4937_v13 = vld [vmem:[%s5065_s28 + $0x50] sm:$0xff]   ;;  %3037 = vst [vmem:[#allocation3 + $0x78] sm:$0xff] %v5001_v34 }
  0x13   : > { %4127 = vmatprep.mubr.msk.bf16.mxu1 %vm481_vm1, %v4933_v5  ;;  %4112 = vmatmul.mubr.msk.bf16.vlgmr.msra.gmra.mrb[0].mxu0 %vm481_vm1, %v4934_v6  ;;  %v4938_v14 = vld [vmem:[%s5065_s28 + $0x18] sm:$0xff]   ;;  %v4940_v16 = vld [vmem:[%s5065_s28 + $0x20] sm:$0xff]   ;;  %v4942_v18 = vld [vmem:[%s5065_s28 + $0x28] sm:$0xff]   ;;  %3038 = vst [vmem:[#allocation3 + $0x80] sm:$0xff] %v5001_v34 }
  0x14   : > { %4128 = vmatmul.mubr.msk.bf16.vlgmr.msra.gmra.mrb[0].mxu1 %vm481_vm1, %v4935_v9  ;;  %4170 = vmatpush3.bf16.msra.mxu0 %v996_v7  ;;  %v4939_v15 = vld [vmem:[%s5065_s28 + $0x58] sm:$0xff]   ;;  %v4941_v17 = vld [vmem:[%s5065_s28 + $0x60] sm:$0xff]   ;;  %v4943_v19 = vld [vmem:[%s5065_s28 + $0x68] sm:$0xff]   ;;  %3039 = vst [vmem:[#allocation3 + $0x88] sm:$0xff] %v5001_v34 }
  0x15   : > { %4140 = vmatpush3.bf16.msra.mxu1 %v761_v10  ;;  %4115 = vmatprep.mubr.msk.bf16.mxu0 %vm481_vm1, %v4936_v12  ;;  %v4944_v20 = vld [vmem:[%s5065_s28 + $0x30] sm:$0xff]   ;;  %v4945_v21 = vld [vmem:[%s5065_s28 + $0x38] sm:$0xff]   ;;  %v5140_v26 = vld [vmem:[%s5065_s28] sm:$0xff]   ;;  %3040 = vst [vmem:[#allocation3 + $0x90] sm:$0xff] %v5001_v34 }
  0x16   : > { %4131 = vmatprep.mubr.msk.bf16.mxu1 %vm481_vm1, %v4937_v13  ;;  %4901 = vmatprep.subr.msk.bf16.mxu1 %vm524_vm0, %v3808_v8  ;;  %v5148_v27 = vld [vmem:[%s5065_s28 + $0x8] sm:$0xff]   ;;  %v5151_v28 = vld [vmem:[%s5065_s28 + $0x10] sm:$0xff]   ;;  %v5169_v31 = vld [vmem:[%s5065_s28 + $0x18] sm:$0xff]   ;;  %3041 = vst [vmem:[#allocation3 + $0x98] sm:$0xff] %v5001_v34 }
  0x17   : > { %4903 = vmatprep.subr.msk.bf16.mxu0 %vm524_vm0, %v3858_v11  ;;  %v5172_v32 = vld [vmem:[%s5065_s28 + $0x20] sm:$0xff]   ;;  %3042 = vst [vmem:[#allocation3 + $0xa0] sm:$0xff] %v5001_v34  ;;  %3043 = vst [vmem:[#allocation3 + $0xa8] sm:$0xff] %v5001_v34  ;;  %v4951_v36 = vld [vmem:[%s5065_s28 + $0x28] sm:$0xff]  }
  0x18   : > { %3044 = vst [vmem:[#allocation3 + $0xb0] sm:$0xff] %v5001_v34  ;;  %3045 = vst [vmem:[#allocation3 + $0xb8] sm:$0xff] %v5001_v34  ;;  %v4952_v37 = vld [vmem:[%s5065_s28 + $0x30] sm:$0xff]   ;;  %v4953_v38 = vld [vmem:[%s5065_s28 + $0x38] sm:$0xff]  }
  0x19   : > { %3046 = vst [vmem:[#allocation3 + $0xc0] sm:$0xff] %v5001_v34  ;;  %3047 = vst [vmem:[#allocation3 + $0xc8] sm:$0xff] %v5001_v34  ;;  %v4954_v39 = vld [vmem:[%s5065_s28 + $0x40] sm:$0xff]   ;;  %v4955_v40 = vld [vmem:[%s5065_s28 + $0x48] sm:$0xff]  }
  0x1a   : > { %3048 = vst [vmem:[#allocation3 + $0xd0] sm:$0xff] %v5001_v34  ;;  %3049 = vst [vmem:[#allocation3 + $0xd8] sm:$0xff] %v5001_v34  ;;  %v4956_v41 = vld [vmem:[%s5065_s28 + $0x50] sm:$0xff]   ;;  %v4957_v42 = vld [vmem:[%s5065_s28 + $0x58] sm:$0xff]  }
  0x1b   : > { %4116 = vmatmul.mubr.msk.bf16.gmra.mrb[4].mxu0 %vm481_vm1, %v4938_v14  ;;  %3050 = vst [vmem:[#allocation3 + $0xe0] sm:$0xff] %v5001_v34  ;;  %3051 = vst [vmem:[#allocation3 + $0xe8] sm:$0xff] %v5001_v34  ;;  %v4958_v43 = vld [vmem:[%s5065_s28 + $0x60] sm:$0xff]   ;;  %v4959_v44 = vld [vmem:[%s5065_s28 + $0x68] sm:$0xff]  }
  0x1c   : > { %4132 = vmatmul.mubr.msk.bf16.gmra.mrb[4].mxu1 %vm481_vm1, %v4939_v15  ;;  %4119 = vmatprep.mubr.msk.bf16.mxu0 %vm481_vm1, %v4940_v16  ;;  %3052 = vst [vmem:[#allocation3 + $0xf0] sm:$0xff] %v5001_v34  ;;  %3053 = vst [vmem:[#allocation3 + $0xf8] sm:$0xff] %v5001_v34  ;;  %v4960_v45 = vld [vmem:[%s5065_s28 + $0x70] sm:$0xff]   ;;  %v4961_v46 = vld [vmem:[%s5065_s28 + $0x78] sm:$0xff]  }
  0x1d   : > { %4135 = vmatprep.mubr.msk.bf16.mxu1 %vm481_vm1, %v4941_v17  ;;  %v4962_v47 = vld [vmem:[%s5065_s28 + $0x10] sm:$0xff]   ;;  %v4963_v49 = vld [vmem:[%s5065_s28 + $0x18] sm:$0xff]   ;;  %v4964_v50 = vld [vmem:[%s5065_s28 + $0x20] sm:$0xff]  }
  0x1e   : > { %v4965_v52 = vld [vmem:[%s5065_s28 + $0x28] sm:$0xff]   ;;  %v4966_v53 = vld [vmem:[%s5065_s28 + $0x30] sm:$0xff]   ;;  %v4967_v54 = vld [vmem:[%s5065_s28 + $0x38] sm:$0xff]  }
  0x1f   : > { %v4968_v55 = vld [vmem:[%s5065_s28 + $0x40] sm:$0xff]   ;;  %v4969_v56 = vld [vmem:[%s5065_s28 + $0x48] sm:$0xff]   ;;  %v4970_v57 = vld [vmem:[%s5065_s28 + $0x50] sm:$0xff]  }
  0x20   : > { %v4971_v58 = vld [vmem:[%s5065_s28 + $0x58] sm:$0xff]   ;;  %v4972_v59 = vld [vmem:[%s5065_s28 + $0x60] sm:$0xff]   ;;  %v4973_v60 = vld [vmem:[%s5065_s28 + $0x68] sm:$0xff]  }
  0x21   : > { %v4974_v61 = vld [vmem:[%s5065_s28 + $0x70] sm:$0xff]   ;;  %v4975_v62 = vld [vmem:[%s5065_s28 + $0x78] sm:$0xff]  }
  0x23   : > { %4120 = vmatmul.mubr.msk.bf16.gmra.mrb[8].mxu0 %vm481_vm1, %v4942_v18 }
  0x24   : > { %4136 = vmatmul.mubr.msk.bf16.gmra.mrb[8].mxu1 %vm481_vm1, %v4943_v19  ;;  %4123 = vmatprep.mubr.msk.bf16.mxu0 %vm481_vm1, %v4944_v20 }
  0x25   : > { %4141 = vmatprep.mubr.msk.bf16.mxu1 %vm481_vm1, %v4932_v4 }
  0x2b   : > { %4124 = vmatmul.mubr.msk.bf16.gmra.mrb[12].mxu0 %vm481_vm1, %v4945_v21 }
  0x2c   : > { %4142 = vmatmul.mubr.msk.bf16.vlgmr.msra.gmra.mrb[12].mxu1 %vm481_vm1, %v4934_v6  ;;  %4171 = vmatprep.mubr.msk.bf16.mxu0 %vm481_vm1, %v4932_v4 }
  0x2d   : > { %4200 = vmatpush3.bf16.msra.mxu1 %v1391_v22  ;;  %4145 = vmatprep.mubr.msk.bf16.mxu1 %vm481_vm1, %v4936_v12 }
  0x2e   : > { %4902 = vmatprep.subr.msk.bf16.mxu1 %vm524_vm0, %v3841_v23 }
  0x33   : > { %4172 = vmatmul.mubr.msk.bf16.vlgmr.msra.gmra.mrb[16].mxu0 %vm481_vm1, %v4934_v6 }
  0x34   : > { %4146 = vmatmul.mubr.msk.bf16.gmra.mrb[16].mxu1 %vm481_vm1, %v4938_v14  ;;  %4175 = vmatprep.mubr.msk.bf16.mxu0 %vm481_vm1, %v4936_v12 }
  0x35   : > { %4149 = vmatprep.mubr.msk.bf16.mxu1 %vm481_vm1, %v4940_v16  ;;  %4268 = vmatpush3.bf16.msra.mxu0 %v1916_v24 }
  0x36   : > { %4904 = vmatprep.subr.msk.bf16.mxu0 %vm524_vm0, %v3903_v25 }
  0x3b   : > { %4176 = vmatmul.mubr.msk.bf16.gmra.mrb[20].mxu0 %vm481_vm1, %v4938_v14 }
  0x3c   : > { %4150 = vmatmul.mubr.msk.bf16.gmra.mrb[20].mxu1 %vm481_vm1, %v4942_v18  ;;  %4179 = vmatprep.mubr.msk.bf16.mxu0 %vm481_vm1, %v4940_v16 }
  0x3d   : > { %4153 = vmatprep.mubr.msk.bf16.mxu1 %vm481_vm1, %v4944_v20 }
  0x43   : > { %4180 = vmatmul.mubr.msk.bf16.gmra.mrb[24].mxu0 %vm481_vm1, %v4942_v18 }
  0x44   : > { %4154 = vmatmul.mubr.msk.bf16.gmra.mrb[24].mxu1 %vm481_vm1, %v4945_v21  ;;  %4183 = vmatprep.mubr.msk.bf16.mxu0 %vm481_vm1, %v4944_v20 }
  0x45   : > { %4157 = vmatprep.mubr.msk.bf16.mxu1 %vm481_vm1, %v4933_v5 }
  0x4b   : > { %4184 = vmatmul.mubr.msk.bf16.gmra.mrb[28].mxu0 %vm481_vm1, %v4945_v21 }
  0x4c   : > { %4158 = vmatmul.mubr.msk.bf16.gmra.mrb[28].mxu1 %vm481_vm1, %v4935_v9  ;;  %4187 = vmatprep.mubr.msk.bf16.mxu0 %vm481_vm1, %v4933_v5 }
  0x4d   : > { %4161 = vmatprep.mubr.msk.bf16.mxu1 %vm481_vm1, %v4937_v13 }
  0x53   : > { %4188 = vmatmul.mubr.msk.bf16.gmra.mrb[32].mxu0 %vm481_vm1, %v4935_v9 }
  0x54   : > { %4162 = vmatmul.mubr.msk.bf16.gmra.mrb[32].mxu1 %vm481_vm1, %v4939_v15  ;;  %4191 = vmatprep.mubr.msk.bf16.mxu0 %vm481_vm1, %v4937_v13 }
  0x55   : > { %4165 = vmatprep.mubr.msk.bf16.mxu1 %vm481_vm1, %v4941_v17 }
  0x5b   : > { %4192 = vmatmul.mubr.msk.bf16.gmra.mrb[36].mxu0 %vm481_vm1, %v4939_v15 }
  0x5c   : > { %4166 = vmatmul.mubr.msk.bf16.gmra.mrb[36].mxu1 %vm481_vm1, %v4943_v19  ;;  %4195 = vmatprep.mubr.msk.bf16.mxu0 %vm481_vm1, %v4941_v17 }
  0x5d   : > { %4201 = vmatprep.mubr.msk.bf16.mxu1 %vm481_vm1, %v5140_v26 }
  0x63   : > { %4196 = vmatmul.mubr.msk.bf16.gmra.mrb[40].mxu0 %vm481_vm1, %v4943_v19 }
  0x64   : > { %4202 = vmatmul.mubr.msk.bf16.vlgmr.msra.gmra.mrb[40].mxu1 %vm481_vm1, %v5148_v27  ;;  %4269 = vmatprep.mubr.msk.bf16.mxu0 %vm481_vm1, %v5140_v26 }
  0x65   : > { %4234 = vmatpush3.bf16.msra.mxu1 %v1653_v29  ;;  %4205 = vmatprep.mubr.msk.bf16.mxu1 %vm481_vm1, %v5151_v28 }
  0x66   : > { %4905 = vmatprep.subr.msk.bf16.mxu1 %vm524_vm0, %v5158_v30 }
  0x6b   : > { %4270 = vmatmul.mubr.msk.bf16.vlgmr.msra.gmra.mrb[44].mxu0 %vm481_vm1, %v5148_v27 }
  0x6c   : > { %4206 = vmatmul.mubr.msk.bf16.gmra.mrb[44].mxu1 %vm481_vm1, %v5169_v31  ;;  %4273 = vmatprep.mubr.msk.bf16.mxu0 %vm481_vm1, %v5151_v28 }
  0x6d   : > { %4209 = vmatprep.mubr.msk.bf16.mxu1 %vm481_vm1, %v5172_v32  ;;  %4302 = vmatpush3.bf16.msra.mxu0 %v2320_v33 }
  0x6e   : > { %4906 = vmatprep.subr.msk.bf16.mxu0 %vm524_vm0, %v3947_v35 }
  0x73   : > { %4274 = vmatmul.mubr.msk.bf16.gmra.mrb[16].mxu0 %vm481_vm1, %v5169_v31 }
  0x74   : > { %4210 = vmatmul.mubr.msk.bf16.gmra.mrb[48].mxu1 %vm481_vm1, %v4951_v36  ;;  %4277 = vmatprep.mubr.msk.bf16.mxu0 %vm481_vm1, %v5172_v32 }
  0x75   : > { %4213 = vmatprep.mubr.msk.bf16.mxu1 %vm481_vm1, %v4952_v37 }
  0x7b   : > { %4278 = vmatmul.mubr.msk.bf16.gmra.mrb[20].mxu0 %vm481_vm1, %v4951_v36 }
  0x7c   : > { %4214 = vmatmul.mubr.msk.bf16.gmra.mrb[52].mxu1 %vm481_vm1, %v4953_v38  ;;  %4281 = vmatprep.mubr.msk.bf16.mxu0 %vm481_vm1, %v4952_v37 }
  0x7d   : > { %4217 = vmatprep.mubr.msk.bf16.mxu1 %vm481_vm1, %v4954_v39 }
  0x83   : > { %4282 = vmatmul.mubr.msk.bf16.gmra.mrb[24].mxu0 %vm481_vm1, %v4953_v38 }
  0x84   : > { %4218 = vmatmul.mubr.msk.bf16.gmra.mrb[56].mxu1 %vm481_vm1, %v4955_v40  ;;  %4285 = vmatprep.mubr.msk.bf16.mxu0 %vm481_vm1, %v4954_v39 }
  0x85   : > { %4221 = vmatprep.mubr.msk.bf16.mxu1 %vm481_vm1, %v4956_v41 }
  0x8b   : > { %4286 = vmatmul.mubr.msk.bf16.gmra.mrb[28].mxu0 %vm481_vm1, %v4955_v40 }
  0x8c   : > { %4222 = vmatmul.mubr.msk.bf16.gmra.mrb[0].mxu1 %vm481_vm1, %v4957_v42  ;;  %4289 = vmatprep.mubr.msk.bf16.mxu0 %vm481_vm1, %v4956_v41 }
  0x8d   : > { %4225 = vmatprep.mubr.msk.bf16.mxu1 %vm481_vm1, %v4958_v43 }
  0x93   : > { %4290 = vmatmul.mubr.msk.bf16.gmra.mrb[32].mxu0 %vm481_vm1, %v4957_v42 }
  0x94   : > { %4226 = vmatmul.mubr.msk.bf16.gmra.mrb[4].mxu1 %vm481_vm1, %v4959_v44  ;;  %4293 = vmatprep.mubr.msk.bf16.mxu0 %vm481_vm1, %v4958_v43 }
  0x95   : > { %4229 = vmatprep.mubr.msk.bf16.mxu1 %vm481_vm1, %v4960_v45 }
  0x9b   : > { %4294 = vmatmul.mubr.msk.bf16.gmra.mrb[36].mxu0 %vm481_vm1, %v4959_v44 }
  0x9c   : > { %4230 = vmatmul.mubr.msk.bf16.gmra.mrb[8].mxu1 %vm481_vm1, %v4961_v46  ;;  %4297 = vmatprep.mubr.msk.bf16.mxu0 %vm481_vm1, %v4960_v45 }
  0x9d   : > { %4235 = vmatprep.mubr.msk.bf16.mxu1 %vm481_vm1, %v5140_v26 }
  0xa3   : > { %4298 = vmatmul.mubr.msk.bf16.gmra.mrb[40].mxu0 %vm481_vm1, %v4961_v46 }
  0xa4   : > { %4236 = vmatmul.mubr.msk.bf16.vlgmr.msra.gmra.mrb[60].mxu1 %vm481_vm1, %v5148_v27  ;;  %4303 = vmatprep.mubr.msk.bf16.mxu0 %vm481_vm1, %v4962_v47 }
  0xa5   : > { %4332 = vmatpush3.bf16.msra.mxu1 %v2554_v48  ;;  %4239 = vmatprep.mubr.msk.bf16.mxu1 %vm481_vm1, %v5151_v28 }
  0xab   : > { %4304 = vmatmul.mubr.msk.bf16.vlgmr.msra.gmra.mrb[48].mxu0 %vm481_vm1, %v4963_v49 }
  0xac   : > { %4240 = vmatmul.mubr.msk.bf16.gmra.mrb[12].mxu1 %vm481_vm1, %v5169_v31  ;;  %4307 = vmatprep.mubr.msk.bf16.mxu0 %vm481_vm1, %v4964_v50 }
  0xad   : > { %4243 = vmatprep.mubr.msk.bf16.mxu1 %vm481_vm1, %v5172_v32  ;;  %4362 = vmatpush3.bf16.msra.mxu0 %v2788_v51 }
  0xb3   : > { %4308 = vmatmul.mubr.msk.bf16.gmra.mrb[52].mxu0 %vm481_vm1, %v4965_v52 }
  0xb4   : > { %4244 = vmatmul.mubr.msk.bf16.gmra.mrb[16].mxu1 %vm481_vm1, %v4951_v36  ;;  %4311 = vmatprep.mubr.msk.bf16.mxu0 %vm481_vm1, %v4966_v53 }
  0xb5   : > { %4247 = vmatprep.mubr.msk.bf16.mxu1 %vm481_vm1, %v4952_v37 }
  0xbb   : > { %4312 = vmatmul.mubr.msk.bf16.gmra.mrb[56].mxu0 %vm481_vm1, %v4967_v54 }
  0xbc   : > { %4248 = vmatmul.mubr.msk.bf16.gmra.mrb[20].mxu1 %vm481_vm1, %v4953_v38  ;;  %4315 = vmatprep.mubr.msk.bf16.mxu0 %vm481_vm1, %v4968_v55 }
  0xbd   : > { %4251 = vmatprep.mubr.msk.bf16.mxu1 %vm481_vm1, %v4954_v39 }
  0xc3   : > { %4316 = vmatmul.mubr.msk.bf16.gmra.mrb[60].mxu0 %vm481_vm1, %v4969_v56 }
  0xc4   : > { %4252 = vmatmul.mubr.msk.bf16.gmra.mrb[24].mxu1 %vm481_vm1, %v4955_v40  ;;  %4319 = vmatprep.mubr.msk.bf16.mxu0 %vm481_vm1, %v4970_v57 }
  0xc5   : > { %4255 = vmatprep.mubr.msk.bf16.mxu1 %vm481_vm1, %v4956_v41 }
  0xcb   : > { %4320 = vmatmul.mubr.msk.bf16.gmra.mrb[64].mxu0 %vm481_vm1, %v4971_v58 }
  0xcc   : > { %4256 = vmatmul.mubr.msk.bf16.gmra.mrb[28].mxu1 %vm481_vm1, %v4957_v42  ;;  %4323 = vmatprep.mubr.msk.bf16.mxu0 %vm481_vm1, %v4972_v59 }
  0xcd   : > { %4259 = vmatprep.mubr.msk.bf16.mxu1 %vm481_vm1, %v4958_v43 }
  0xd3   : > { %4324 = vmatmul.mubr.msk.bf16.gmra.mrb[68].mxu0 %vm481_vm1, %v4973_v60 }
  0xd4   : > { %4260 = vmatmul.mubr.msk.bf16.gmra.mrb[32].mxu1 %vm481_vm1, %v4959_v44  ;;  %4327 = vmatprep.mubr.msk.bf16.mxu0 %vm481_vm1, %v4974_v61 }
  0xd5   : > { %4263 = vmatprep.mubr.msk.bf16.mxu1 %vm481_vm1, %v4960_v45 }
  0xdb   : > { %4328 = vmatmul.mubr.msk.bf16.gmra.mrb[72].mxu0 %vm481_vm1, %v4975_v62 }
  0xdc   : > { %4264 = vmatmul.mubr.msk.bf16.gmra.mrb[36].mxu1 %vm481_vm1, %v4961_v46  ;;  %4363 = vmatprep.mubr.msk.bf16.mxu0 %vm481_vm1, %v4962_v47 }
  0xdd   : > { %4333 = vmatprep.mubr.msk.bf16.mxu1 %vm481_vm1, %v4962_v47 }
  0xe3   : > { %4364 = vmatmul.mubr.msk.bf16.vlgmr.msra.gmra.mrb[44].mxu0 %vm481_vm1, %v4963_v49 }
  0xe4   : > { %4334 = vmatmul.mubr.msk.bf16.vlgmr.msra.gmra.mrb[60].mxu1 %vm481_vm1, %v4963_v49  ;;  %4367 = vmatprep.mubr.msk.bf16.mxu0 %vm481_vm1, %v4964_v50 }
  0xe5   : > { %4337 = vmatprep.mubr.msk.bf16.mxu1 %vm481_vm1, %v4964_v50 }
  0xe6   : > { %v4113_v63 = vpop.f32.mrb[0].mxu0 }
  0xe7   : > { %v562_v0 = vpop.f32.mrb[1].mxu0 }
  0xe8   : > { %v4114_v1 = vpop.f32.mrb[2].mxu0 }
  0xe9   : > { %v565_v2 = vpop.f32.mrb[3].mxu0 }
  0xeb   : > { %4368 = vmatmul.mubr.msk.bf16.gmra.mrb[16].mxu0 %vm481_vm1, %v4965_v52 }
  0xec   : > { %4338 = vmatmul.mubr.msk.bf16.gmra.mrb[12].mxu1 %vm481_vm1, %v4965_v52  ;;  %4371 = vmatprep.mubr.msk.bf16.mxu0 %vm481_vm1, %v4966_v53 }
  0xed   : > { %4341 = vmatprep.mubr.msk.bf16.mxu1 %vm481_vm1, %v4966_v53 }
  0xee   : > { %v4117_v3 = vpop.f32.mrb[4].mxu0 }
  0xef   : > { %v578_v4 = vpop.f32.mrb[5].mxu0 }
  0xf0   : > { %v4118_v5 = vpop.f32.mrb[6].mxu0 }
  0xf1   : > { %v581_v6 = vpop.f32.mrb[7].mxu0 }
  0xf3   : > { %4372 = vmatmul.mubr.msk.bf16.gmra.mrb[20].mxu0 %vm481_vm1, %v4967_v54 }
  0xf4   : > { %4342 = vmatmul.mubr.msk.bf16.gmra.mrb[16].mxu1 %vm481_vm1, %v4967_v54  ;;  %4375 = vmatprep.mubr.msk.bf16.mxu0 %vm481_vm1, %v4968_v55 }
  0xf5   : > { %4345 = vmatprep.mubr.msk.bf16.mxu1 %vm481_vm1, %v4968_v55 }
  0xf6   : > { %v4121_v7 = vpop.f32.mrb[8].mxu0 }
  0xf7   : > { %v594_v8 = vpop.f32.mrb[9].mxu0 }
  0xf8   : > { %v4122_v9 = vpop.f32.mrb[10].mxu0 }
  0xf9   : > { %v597_v10 = vpop.f32.mrb[11].mxu0 }
  0xfb   : > { %4376 = vmatmul.mubr.msk.bf16.gmra.mrb[24].mxu0 %vm481_vm1, %v4969_v56 }
  0xfc   : > { %4346 = vmatmul.mubr.msk.bf16.gmra.mrb[20].mxu1 %vm481_vm1, %v4969_v56  ;;  %4379 = vmatprep.mubr.msk.bf16.mxu0 %vm481_vm1, %v4970_v57 }
  0xfd   : > { %4349 = vmatprep.mubr.msk.bf16.mxu1 %vm481_vm1, %v4970_v57 }
  0xfe   : > { %v4125_v11 = vpop.f32.mrb[12].mxu0 }
  0xff   : > { %v610_v12 = vpop.f32.mrb[13].mxu0 }
 0x100   : > { %v4126_v13 = vpop.f32.mrb[14].mxu0 }
 0x101   : > { %v613_v14 = vpop.f32.mrb[15].mxu0 }
 0x103   : > { %4380 = vmatmul.mubr.msk.bf16.gmra.mrb[28].mxu0 %vm481_vm1, %v4971_v58 }
 0x104   : > { %4350 = vmatmul.mubr.msk.bf16.gmra.mrb[24].mxu1 %vm481_vm1, %v4971_v58  ;;  %4383 = vmatprep.mubr.msk.bf16.mxu0 %vm481_vm1, %v4972_v59 }
 0x105   : > { %4353 = vmatprep.mubr.msk.bf16.mxu1 %vm481_vm1, %v4972_v59 }
 0x10b   : > { %4384 = vmatmul.mubr.msk.bf16.gmra.mrb[32].mxu0 %vm481_vm1, %v4973_v60 }
 0x10c   : > { %4354 = vmatmul.mubr.msk.bf16.gmra.mrb[28].mxu1 %vm481_vm1, %v4973_v60  ;;  %4387 = vmatprep.mubr.msk.bf16.mxu0 %vm481_vm1, %v4974_v61  ;;  %v3084_v60 = vld [vmem:[#allocation3 + $0xf2] sm:$0xff] }
 0x10d   : > { %4357 = vmatprep.mubr.msk.bf16.mxu1 %vm481_vm1, %v4974_v61 }
 0x113   : > { %4388 = vmatmul.mubr.msk.bf16.gmra.mrb[36].mxu0 %vm481_vm1, %v4975_v62 }
 0x114   : > { %4358 = vmatmul.mubr.msk.bf16.gmra.mrb[32].mxu1 %vm481_vm1, %v4975_v62  ;;  %v3082_v62 = vld [vmem:[#allocation3 + $0xe2] sm:$0xff] }
 0x137   : > { %v5304_v15 = vpop.f32.mrb[40].mxu1 }
 0x138   : > { %v5306_v16 = vpop.f32.mrb[41].mxu1 }
 0x139   : > { %v5308_v17 = vpop.f32.mrb[42].mxu1 }
 0x13a   : > { %v5310_v18 = vpop.f32.mrb[43].mxu1 }
 0x13f   : > { %v4207_v19 = vpop.f32.mrb[44].mxu1 }
 0x140   : > { %v5312_v20 = vadd.f32 %v4207_v19, %v4113_v63  ;;  %v1443_v21 = vpop.f32.mrb[45].mxu1 }
 0x141   : > { %v5314_v22 = vadd.f32 %v1443_v21, %v562_v0  ;;  %v4208_v23 = vpop.f32.mrb[46].mxu1 }
 0x142   : > { %v5316_v24 = vadd.f32 %v4208_v23, %v4114_v1  ;;  %v1446_v25 = vpop.f32.mrb[47].mxu1  ;;  %v3054_v23 = vld [vmem:[#allocation3 + $0x2] sm:$0xff] }
 0x143   : > { %v5318_v26 = vadd.f32 %v1446_v25, %v565_v2 }
 0x147   : > { %v4211_v27 = vpop.f32.mrb[48].mxu1 }
 0x148   : > { %v5320_v28 = vadd.f32 %v4211_v27, %v4117_v3  ;;  %v1459_v29 = vpop.f32.mrb[49].mxu1 }
 0x149   : > { %v5322_v30 = vadd.f32 %v1459_v29, %v578_v4  ;;  %v4212_v31 = vpop.f32.mrb[50].mxu1 }
 0x14a   : > { %v5324_v32 = vadd.f32 %v4212_v31, %v4118_v5  ;;  %v1462_v33 = vpop.f32.mrb[51].mxu1 }
 0x14b   : > { %v5326_v34 = vadd.f32 %v1462_v33, %v581_v6  ;;  %v3085_v6 = vld [vmem:[#allocation3 + $0xfa] sm:$0x3f] }
 0x14f   : > { %v4215_v35 = vpop.f32.mrb[52].mxu1 }
 0x150   : > { %v5328_v36 = vadd.f32 %v4215_v35, %v4121_v7  ;;  %v1475_v37 = vpop.f32.mrb[53].mxu1 }
 0x151   : > { %v5330_v38 = vadd.f32 %v1475_v37, %v594_v8  ;;  %v4216_v39 = vpop.f32.mrb[54].mxu1  ;;  %v3083_v8 = vld [vmem:[#allocation3 + $0xea] sm:$0x3f] }
 0x152   : > { %v5332_v40 = vadd.f32 %v4216_v39, %v4122_v9  ;;  %v1478_v41 = vpop.f32.mrb[55].mxu1 }
 0x153   : > { %v5334_v42 = vadd.f32 %v1478_v41, %v597_v10  ;;  %v3060_v41 = vld [vmem:[#allocation3 + $0x32] sm:$0xff] }
 0x157   : > { %v4219_v43 = vpop.f32.mrb[56].mxu1 }
 0x158   : > { %v5336_v44 = vadd.f32 %v4219_v43, %v4125_v11  ;;  %v1491_v45 = vpop.f32.mrb[57].mxu1 }
 0x159   : > { %v5338_v46 = vadd.f32 %v1491_v45, %v610_v12  ;;  %v4220_v47 = vpop.f32.mrb[58].mxu1  ;;  %v3058_v45 = vld [vmem:[#allocation3 + $0x22] sm:$0xff] }
 0x15a   : > { %v5340_v48 = vadd.f32 %v4220_v47, %v4126_v13  ;;  %v1494_v49 = vpop.f32.mrb[59].mxu1  ;;  %v3057_v47 = vld [vmem:[#allocation3 + $0x1a] sm:$0x3f] }
 0x15b   : > { %v5342_v50 = vadd.f32 %v1494_v49, %v613_v14  ;;  %v3056_v14 = vld [vmem:[#allocation3 + $0x12] sm:$0xff] }
 0x15f   : > { %v5344_v51 = vpop.f32.mrb[0].mxu1 }
 0x160   : > { %v5346_v52 = vpop.f32.mrb[1].mxu1 }
 0x161   : > { %v5348_v53 = vpop.f32.mrb[2].mxu1 }
 0x162   : > { %v5350_v54 = vpop.f32.mrb[3].mxu1 }
 0x167   : > { %v5352_v55 = vpop.f32.mrb[4].mxu1 }
 0x168   : > { %v5354_v56 = vpop.f32.mrb[5].mxu1 }
 0x169   : > { %v5356_v57 = vpop.f32.mrb[6].mxu1 }
 0x16a   : > { %v5358_v58 = vpop.f32.mrb[7].mxu1 }
 0x16f   : > { %v4231_v59 = vpop.f32.mrb[8].mxu1 }
 0x170   : > { %v1539_v61 = vpop.f32.mrb[9].mxu1  ;;  %v3148_v0 = vadd.f32 %v4231_v59, %v3084_v60  ;;  %v3055_v59 = vld [vmem:[#allocation3 + $0xa] sm:$0x3f] }
 0x171   : > { %v4232_v63 = vpop.f32.mrb[10].mxu1  ;;  %v3146_v2 = vadd.f32 %v3082_v62, %v1539_v61 }
 0x172   : > { %v1542_v1 = vpop.f32.mrb[11].mxu1  ;;  %3180 = vst [vmem:[#allocation3 + $0xf2] sm:$0xff] %v3148_v0  ;;  %1649 = vst [vmem:[#allocation2 + $0xf8] sm:$0xff] %v4232_v63 }
 0x173   : > { %3178 = vst [vmem:[#allocation3 + $0xe2] sm:$0xff] %v3146_v2  ;;  %1647 = vst [vmem:[#allocation2 + $0xe8] sm:$0xff] %v1542_v1  ;;  %v3064_v2 = vld [vmem:[#allocation3 + $0x52] sm:$0xff] }
 0x176   : > { %v4299_v3 = vpop.f32.mrb[40].mxu0 }
 0x177   : > { %v2064_v4 = vpop.f32.mrb[41].mxu0  ;;  %2174 = vst [vmem:[#allocation2 + $0x2f0] sm:$0xff] %v4299_v3 }
 0x178   : > { %v4300_v5 = vpop.f32.mrb[42].mxu0  ;;  %2172 = vst [vmem:[#allocation2 + $0x2e0] sm:$0xff] %v2064_v4 }
 0x179   : > { %v2067_v7 = vpop.f32.mrb[43].mxu0  ;;  %v3117_v9 = vld [vmem:[#allocation2 + $0xf8] sm:$0x3f]  ;;  %2175 = vst [vmem:[#allocation2 + $0x2f8] sm:$0xff] %v4300_v5 }
 0x17a   : > { %v3149_v10 = vadd.f32 %v3117_v9, %v3085_v6  ;;  %v3115_v11 = vld [vmem:[#allocation2 + $0xe8] sm:$0x3f]  ;;  %2173 = vst [vmem:[#allocation2 + $0x2e8] sm:$0xff] %v2067_v7  ;;  %v3061_v5 = vld [vmem:[#allocation3 + $0x3a] sm:$0x3f] }
 0x17b   : > { %v3147_v12 = vadd.f32 %v3115_v11, %v3083_v8 }
 0x17c   : > { %3181 = vst [vmem:[#allocation3 + $0xfa] sm:$0x3f] %v3149_v10 }
 0x17d   : > { %3179 = vst [vmem:[#allocation3 + $0xea] sm:$0x3f] %v3147_v12 }
 0x17e   : > { %v4305_v13 = vpop.f32.mrb[48].mxu0 }
 0x17f   : > { %v4736_v19 = vadd.f32 %v4305_v13, %v5304_v15  ;;  %v2356_v21 = vpop.f32.mrb[49].mxu0 }
 0x180   : > { %v4740_v25 = vadd.f32 %v2356_v21, %v5306_v16  ;;  %v4306_v27 = vpop.f32.mrb[50].mxu0  ;;  %v3068_v21 = vld [vmem:[#allocation3 + $0x72] sm:$0xff] }
 0x181   : > { %v3120_v29 = vadd.f32 %v4736_v19, %v3056_v14  ;;  %v4744_v31 = vadd.f32 %v4306_v27, %v5308_v17  ;;  %v2359_v33 = vpop.f32.mrb[51].mxu0  ;;  %v3065_v27 = vld [vmem:[#allocation3 + $0x5a] sm:$0x3f] }
 0x182   : > { %v3118_v35 = vadd.f32 %v4740_v25, %v3054_v23  ;;  %v4748_v37 = vadd.f32 %v2359_v33, %v5310_v18 }
 0x183   : > { %3152 = vst [vmem:[#allocation3 + $0x12] sm:$0xff] %v3120_v29  ;;  %2526 = vst [vmem:[#allocation2 + $0x18] sm:$0xff] %v4744_v31 }
 0x184   : > { %3150 = vst [vmem:[#allocation3 + $0x2] sm:$0xff] %v3118_v35  ;;  %2524 = vst [vmem:[#allocation2 + $0x8] sm:$0xff] %v4748_v37 }
 0x186   : > { %v4309_v39 = vpop.f32.mrb[52].mxu0 }
 0x187   : > { %v4399_v15 = vadd.f32 %v5312_v20, %v4309_v39  ;;  %v2372_v43 = vpop.f32.mrb[53].mxu0 }
 0x188   : > { %v4406_v16 = vadd.f32 %v5314_v22, %v2372_v43  ;;  %v4310_v49 = vpop.f32.mrb[54].mxu0 }
 0x189   : > { %v3124_v17 = vadd.f32 %v4399_v15, %v3060_v41  ;;  %v4413_v60 = vadd.f32 %v5316_v24, %v4310_v49  ;;  %v2375_v61 = vpop.f32.mrb[55].mxu0  ;;  %v3062_v24 = vld [vmem:[#allocation3 + $0x42] sm:$0xff] }
 0x18a   : > { %v3089_v18 = vld [vmem:[#allocation2 + $0x18] sm:$0x3f]  ;;  %v3122_v62 = vadd.f32 %v4406_v16, %v3058_v45  ;;  %v4420_v63 = vadd.f32 %v5318_v26, %v2375_v61  ;;  %v3059_v26 = vld [vmem:[#allocation3 + $0x2a] sm:$0x3f] }
 0x18b   : > { %v3121_v0 = vadd.f32 %v3089_v18, %v3057_v47  ;;  %v3087_v1 = vld [vmem:[#allocation2 + $0x8] sm:$0x3f]  ;;  %3156 = vst [vmem:[#allocation3 + $0x32] sm:$0xff] %v3124_v17  ;;  %2530 = vst [vmem:[#allocation2 + $0x38] sm:$0xff] %v4413_v60  ;;  %v3072_v47 = vld [vmem:[#allocation3 + $0x92] sm:$0xff] }
 0x18c   : > { %v3119_v20 = vadd.f32 %v3087_v1, %v3055_v59  ;;  %3154 = vst [vmem:[#allocation3 + $0x22] sm:$0xff] %v3122_v62  ;;  %2528 = vst [vmem:[#allocation2 + $0x28] sm:$0xff] %v4420_v63  ;;  %v3069_v59 = vld [vmem:[#allocation3 + $0x7a] sm:$0x3f] }
 0x18d   : > { %3153 = vst [vmem:[#allocation3 + $0x1a] sm:$0x3f] %v3121_v0 }
 0x18e   : > { %3151 = vst [vmem:[#allocation3 + $0xa] sm:$0x3f] %v3119_v20  ;;  %v4313_v22 = vpop.f32.mrb[56].mxu0 }
 0x18f   : > { %v4427_v3 = vadd.f32 %v5320_v28, %v4313_v22  ;;  %v2388_v4 = vpop.f32.mrb[57].mxu0 }
 0x190   : > { %v4434_v6 = vadd.f32 %v5322_v30, %v2388_v4  ;;  %v4314_v7 = vpop.f32.mrb[58].mxu0 }
 0x191   : > { %v3128_v8 = vadd.f32 %v4427_v3, %v3064_v2  ;;  %v4441_v9 = vadd.f32 %v5324_v32, %v4314_v7  ;;  %v2391_v10 = vpop.f32.mrb[59].mxu0  ;;  %v3066_v32 = vld [vmem:[#allocation3 + $0x62] sm:$0xff]  ;;  %v3076_v2 = vld [vmem:[#allocation3 + $0xb2] sm:$0xff] }
 0x192   : > { %v3093_v11 = vld [vmem:[#allocation2 + $0x38] sm:$0x3f]  ;;  %v3126_v12 = vadd.f32 %v4434_v6, %v3062_v24  ;;  %v4448_v13 = vadd.f32 %v5326_v34, %v2391_v10  ;;  %v3063_v34 = vld [vmem:[#allocation3 + $0x4a] sm:$0x3f] }
 0x193   : > { %v3125_v14 = vadd.f32 %v3093_v11, %v3061_v5  ;;  %v3091_v19 = vld [vmem:[#allocation2 + $0x28] sm:$0x3f]  ;;  %3160 = vst [vmem:[#allocation3 + $0x52] sm:$0xff] %v3128_v8  ;;  %2534 = vst [vmem:[#allocation2 + $0x58] sm:$0xff] %v4441_v9  ;;  %v3073_v24 = vld [vmem:[#allocation3 + $0x9a] sm:$0x3f] }
 0x194   : > { %v3123_v28 = vadd.f32 %v3091_v19, %v3059_v26  ;;  %3158 = vst [vmem:[#allocation3 + $0x42] sm:$0xff] %v3126_v12  ;;  %2532 = vst [vmem:[#allocation2 + $0x48] sm:$0xff] %v4448_v13 }
 0x195   : > { %3157 = vst [vmem:[#allocation3 + $0x3a] sm:$0x3f] %v3125_v14  ;;  %v3080_v14 = vld [vmem:[#allocation3 + $0xd2] sm:$0xff] }
 0x196   : > { %3155 = vst [vmem:[#allocation3 + $0x2a] sm:$0x3f] %v3123_v28  ;;  %v4317_v30 = vpop.f32.mrb[60].mxu0 }
 0x197   : > { %v4455_v23 = vadd.f32 %v5328_v36, %v4317_v30  ;;  %v2404_v25 = vpop.f32.mrb[61].mxu0  ;;  %v3078_v30 = vld [vmem:[#allocation3 + $0xc2] sm:$0xff] }
 0x198   : > { %v4462_v29 = vadd.f32 %v5330_v38, %v2404_v25  ;;  %v4318_v31 = vpop.f32.mrb[62].mxu0 }
 0x199   : > { %v3132_v33 = vadd.f32 %v4455_v23, %v3068_v21  ;;  %v4469_v35 = vadd.f32 %v5332_v40, %v4318_v31  ;;  %v2407_v37 = vpop.f32.mrb[63].mxu0  ;;  %v3070_v40 = vld [vmem:[#allocation3 + $0x82] sm:$0xff]  ;;  %v3077_v21 = vld [vmem:[#allocation3 + $0xba] sm:$0x3f] }
 0x19a   : > { %v3097_v39 = vld [vmem:[#allocation2 + $0x58] sm:$0x3f]  ;;  %v3130_v41 = vadd.f32 %v4462_v29, %v3066_v32  ;;  %v4476_v15 = vadd.f32 %v5334_v42, %v2407_v37  ;;  %v3067_v42 = vld [vmem:[#allocation3 + $0x6a] sm:$0x3f] }
 0x19b   : > { %v3129_v43 = vadd.f32 %v3097_v39, %v3065_v27  ;;  %v3095_v45 = vld [vmem:[#allocation2 + $0x48] sm:$0x3f]  ;;  %3164 = vst [vmem:[#allocation3 + $0x72] sm:$0xff] %v3132_v33  ;;  %2538 = vst [vmem:[#allocation2 + $0x78] sm:$0xff] %v4469_v35  ;;  %v3212_v27 = vld [vmem:[#allocation3 + $0xf0] sm:$0xff] }
 0x19c   : > { %v3127_v36 = vadd.f32 %v3095_v45, %v3063_v34  ;;  %3162 = vst [vmem:[#allocation3 + $0x62] sm:$0xff] %v3130_v41  ;;  %2536 = vst [vmem:[#allocation2 + $0x68] sm:$0xff] %v4476_v15  ;;  %v3075_v32 = vld [vmem:[#allocation3 + $0xaa] sm:$0x3f]  ;;  %v3210_v39 = vld [vmem:[#allocation3 + $0xe0] sm:$0xff] }
 0x19d   : > { %3161 = vst [vmem:[#allocation3 + $0x5a] sm:$0x3f] %v3129_v43  ;;  %v3372_v43 = vld [vmem:[#allocation2 + $0x2f2] sm:$0xff] }
 0x19e   : > { %3159 = vst [vmem:[#allocation3 + $0x4a] sm:$0x3f] %v3127_v36  ;;  %v4321_v38 = vpop.f32.mrb[64].mxu0 }
 0x19f   : > { %v4483_v16 = vadd.f32 %v5336_v44, %v4321_v38  ;;  %v2420_v49 = vpop.f32.mrb[65].mxu0 }
 0x1a0   : > { %v4490_v17 = vadd.f32 %v5338_v46, %v2420_v49  ;;  %v4322_v60 = vpop.f32.mrb[66].mxu0 }
 0x1a1   : > { %v3136_v61 = vadd.f32 %v4483_v16, %v3072_v47  ;;  %v4497_v18 = vadd.f32 %v5340_v48, %v4322_v60  ;;  %v2423_v62 = vpop.f32.mrb[67].mxu0  ;;  %v3074_v48 = vld [vmem:[#allocation3 + $0xa2] sm:$0xff] }
 0x1a2   : > { %v3101_v63 = vld [vmem:[#allocation2 + $0x78] sm:$0x3f]  ;;  %v3134_v0 = vadd.f32 %v4490_v17, %v3070_v40  ;;  %v4504_v1 = vadd.f32 %v5342_v50, %v2423_v62  ;;  %v3071_v50 = vld [vmem:[#allocation3 + $0x8a] sm:$0x3f]  ;;  %v3370_v47 = vld [vmem:[#allocation2 + $0x2e2] sm:$0xff] }
 0x1a3   : > { %v3133_v20 = vadd.f32 %v3101_v63, %v3069_v59  ;;  %v3099_v22 = vld [vmem:[#allocation2 + $0x68] sm:$0x3f]  ;;  %3168 = vst [vmem:[#allocation3 + $0x92] sm:$0xff] %v3136_v61  ;;  %2542 = vst [vmem:[#allocation2 + $0x98] sm:$0xff] %v4497_v18 }
 0x1a4   : > { %v3131_v44 = vadd.f32 %v3099_v22, %v3067_v42  ;;  %3166 = vst [vmem:[#allocation3 + $0x82] sm:$0xff] %v3134_v0  ;;  %2540 = vst [vmem:[#allocation2 + $0x88] sm:$0xff] %v4504_v1  ;;  %v3211_v59 = vld [vmem:[#allocation3 + $0xe8] sm:$0xff]  ;;  %v3081_v1 = vld [vmem:[#allocation3 + $0xda] sm:$0x3f] }
 0x1a5   : > { %3165 = vst [vmem:[#allocation3 + $0x7a] sm:$0x3f] %v3133_v20 }
 0x1a6   : > { %3163 = vst [vmem:[#allocation3 + $0x6a] sm:$0x3f] %v3131_v44  ;;  %v4325_v46 = vpop.f32.mrb[68].mxu0 }
 0x1a7   : > { %v4510_v3 = vadd.f32 %v4325_v46, %v5344_v51  ;;  %v2436_v4 = vpop.f32.mrb[69].mxu0  ;;  %v3079_v46 = vld [vmem:[#allocation3 + $0xca] sm:$0x3f] }
 0x1a8   : > { %v4516_v5 = vadd.f32 %v2436_v4, %v5346_v52  ;;  %v4326_v6 = vpop.f32.mrb[70].mxu0 }
 0x1a9   : > { %v3140_v7 = vadd.f32 %v4510_v3, %v3076_v2  ;;  %v4522_v26 = vadd.f32 %v4326_v6, %v5348_v53  ;;  %v2439_v8 = vpop.f32.mrb[71].mxu0 }
 0x1aa   : > { %v3105_v9 = vld [vmem:[#allocation2 + $0x98] sm:$0x3f]  ;;  %v3138_v10 = vadd.f32 %v4516_v5, %v3074_v48  ;;  %v4528_v11 = vadd.f32 %v2439_v8, %v5350_v54 }
 0x1ab   : > { %v3137_v12 = vadd.f32 %v3105_v9, %v3073_v24  ;;  %v3103_v13 = vld [vmem:[#allocation2 + $0x88] sm:$0x3f]  ;;  %3172 = vst [vmem:[#allocation3 + $0xb2] sm:$0xff] %v3140_v7  ;;  %2546 = vst [vmem:[#allocation2 + $0xb8] sm:$0xff] %v4522_v26  ;;  %v3185_v7 = vld [vmem:[#allocation3 + $0x18] sm:$0xff] }
 0x1ac   : > { %v3135_v51 = vadd.f32 %v3103_v13, %v3071_v50  ;;  %3170 = vst [vmem:[#allocation3 + $0xa2] sm:$0xff] %v3138_v10  ;;  %2544 = vst [vmem:[#allocation2 + $0xa8] sm:$0xff] %v4528_v11  ;;  %v3183_v9 = vld [vmem:[#allocation3 + $0x8] sm:$0xff]  ;;  %v3373_v10 = vld [vmem:[#allocation2 + $0x2fa] sm:$0x3f] }
 0x1ad   : > { %3169 = vst [vmem:[#allocation3 + $0x9a] sm:$0x3f] %v3137_v12  ;;  %v3371_v13 = vld [vmem:[#allocation2 + $0x2ea] sm:$0x3f] }
 0x1ae   : > { %3167 = vst [vmem:[#allocation3 + $0x8a] sm:$0x3f] %v3135_v51  ;;  %v4329_v52 = vpop.f32.mrb[72].mxu0 }
 0x1af   : > { %v4265_v19 = vpop.f32.mrb[36].mxu1  ;;  %v4534_v28 = vadd.f32 %v4329_v52, %v5352_v55  ;;  %v2452_v53 = vpop.f32.mrb[73].mxu0  ;;  %v5390_v55 = vld [vmem:[%s5527_s2] ss:$0 sm:$0xff] }
 0x1b0   : > { %v1801_v23 = vpop.f32.mrb[37].mxu1  ;;  %v4540_v54 = vadd.f32 %v2452_v53, %v5354_v56  ;;  %v4330_v25 = vpop.f32.mrb[74].mxu0  ;;  %v3276_v37 = vadd.f32 %v4265_v19, %v3212_v27 }
 0x1b1   : > { %v3144_v29 = vadd.f32 %v4534_v28, %v3080_v14  ;;  %v4266_v31 = vpop.f32.mrb[38].mxu1  ;;  %v4546_v34 = vadd.f32 %v4330_v25, %v5356_v57  ;;  %v2455_v33 = vpop.f32.mrb[75].mxu0  ;;  %v3274_v38 = vadd.f32 %v3210_v39, %v1801_v23  ;;  %v3213_v57 = vld [vmem:[#allocation3 + $0xf8] sm:$0xff]  ;;  %v3182_v25 = vld [vmem:[#allocation3] sm:$0xff] }
 0x1b2   : > { %v3109_v35 = vld [vmem:[#allocation2 + $0xb8] sm:$0x3f]  ;;  %v3142_v41 = vadd.f32 %v4540_v54, %v3078_v30  ;;  %v1804_v15 = vpop.f32.mrb[39].mxu1  ;;  %v4552_v56 = vadd.f32 %v2455_v33, %v5358_v58  ;;  %v3404_v49 = vadd.f32 %v3372_v43, %v3276_v37  ;;  %v3277_v40 = vadd.f32 %v4266_v31, %v3213_v57  ;;  %v5396_v58 = vld [vmem:[%s5528_s3] ss:$0 sm:$0xff]  ;;  %v3184_v30 = vld [vmem:[#allocation3 + $0x10] sm:$0xff] }
 0x1b3   : > { %v3141_v45 = vadd.f32 %v3109_v35, %v3077_v21  ;;  %v3107_v36 = vld [vmem:[#allocation2 + $0xa8] sm:$0x3f]  ;;  %3176 = vst [vmem:[#allocation3 + $0xd2] sm:$0xff] %v3144_v29  ;;  %2550 = vst [vmem:[#allocation2 + $0xd8] sm:$0xff] %v4546_v34  ;;  %v3402_v17 = vadd.f32 %v3370_v47, %v3274_v38  ;;  %v3275_v60 = vadd.f32 %v3211_v59, %v1804_v15  ;;  %v3189_v37 = vld [vmem:[#allocation3 + $0x38] sm:$0xff] }
 0x1b4   : > { %v3139_v16 = vadd.f32 %v3107_v36, %v3075_v32  ;;  %3174 = vst [vmem:[#allocation3 + $0xc2] sm:$0xff] %v3142_v41  ;;  %2548 = vst [vmem:[#allocation2 + $0xc8] sm:$0xff] %v4552_v56  ;;  %v3508_v42 = vmul.f32 %v5390_v55, %v3404_v49  ;;  %v3187_v15 = vld [vmem:[#allocation3 + $0x28] sm:$0xff] }
 0x1b5   : > { %3173 = vst [vmem:[#allocation3 + $0xba] sm:$0x3f] %v3141_v45  ;;  %3436 = vst [vmem:[#allocation3 + $0xf0] sm:$0xff] %v3404_v49  ;;  %v3506_v18 = vmul.f32 %v5390_v55, %v3402_v17  ;;  %v3188_v49 = vld [vmem:[#allocation3 + $0x30] sm:$0xff] }
 0x1b6   : > { %3171 = vst [vmem:[#allocation3 + $0xaa] sm:$0x3f] %v3139_v16  ;;  %3309 = vst [vmem:[#allocation3 + $0xf8] sm:$0xff] %v3277_v40  ;;  %v4365_v61 = vpop.f32.mrb[44].mxu0  ;;  %v3546_v0 = vadd.f32 %v5396_v58, %v3508_v42 }
 0x1b7   : > { %3434 = vst [vmem:[#allocation3 + $0xe0] sm:$0xff] %v3402_v17  ;;  %3307 = vst [vmem:[#allocation3 + $0xe8] sm:$0xff] %v3275_v60  ;;  %v4335_v62 = vpop.f32.mrb[60].mxu1  ;;  %v2824_v63 = vpop.f32.mrb[45].mxu0  ;;  %v3544_v44 = vadd.f32 %v5396_v58, %v3506_v18 }
 0x1b8   : > { %v2590_v20 = vpop.f32.mrb[61].mxu1  ;;  %v4366_v22 = vpop.f32.mrb[46].mxu0  ;;  %2993 = vst [vmem:[#allocation2 + $0x210] sm:$0xff] %v4365_v61  ;;  %v3578_v4 = vmax.f32 %v3546_v0, 0.0  ;;  %2991 = vst [vmem:[#allocation2 + $0x200] sm:$0xff] %v2824_v63  ;;  %v3248_v54 = vadd.f32 %v4335_v62, %v3184_v30 }
 0x1b9   : > { %v4336_v2 = vpop.f32.mrb[62].mxu1  ;;  %v2827_v3 = vpop.f32.mrb[47].mxu0  ;;  %v3576_v5 = vmax.f32 %v3544_v44, 0.0  ;;  %2994 = vst [vmem:[#allocation2 + $0x218] sm:$0xff] %v4366_v22  ;;  %v3246_v29 = vadd.f32 %v3182_v25, %v2590_v20 }
 0x1ba   : > { %v3113_v48 = vld [vmem:[#allocation2 + $0xd8] sm:$0x3f]  ;;  %v2593_v24 = vpop.f32.mrb[63].mxu1  ;;  %3610 = vst [vmem:[%s5405_s15 + $0xf0] sm:$0xff] %v3578_v4  ;;  %v3249_v8 = vadd.f32 %v4336_v2, %v3185_v7  ;;  %2992 = vst [vmem:[#allocation2 + $0x208] sm:$0xff] %v2827_v3 }
 0x1bb   : > { %v3145_v6 = vadd.f32 %v3113_v48, %v3081_v1  ;;  %v3111_v50 = vld [vmem:[#allocation2 + $0xc8] sm:$0x3f]  ;;  %3608 = vst [vmem:[%s5405_s15 + $0xe0] sm:$0xff] %v3576_v5  ;;  %v3247_v12 = vadd.f32 %v3183_v9, %v2593_v24 }
 0x1bc   : > { %v3143_v26 = vadd.f32 %v3111_v50, %v3079_v46  ;;  %3281 = vst [vmem:[#allocation3 + $0x18] sm:$0xff] %v3249_v8  ;;  %v3186_v46 = vld [vmem:[#allocation3 + $0x20] sm:$0xff]  ;;  %v3193_v8 = vld [vmem:[#allocation3 + $0x58] sm:$0xff] }
 0x1bd   : > { %v3341_v11 = vld [vmem:[#allocation3 + $0xf8] sm:$0x3f]  ;;  %3177 = vst [vmem:[#allocation3 + $0xda] sm:$0x3f] %v3145_v6  ;;  %3279 = vst [vmem:[#allocation3 + $0x8] sm:$0xff] %v3247_v12  ;;  %v3191_v12 = vld [vmem:[#allocation3 + $0x48] sm:$0xff] }
 0x1be   : > { %v3405_v51 = vadd.f32 %v3373_v10, %v3341_v11  ;;  %v3339_v52 = vld [vmem:[#allocation3 + $0xe8] sm:$0x3f]  ;;  %3175 = vst [vmem:[#allocation3 + $0xca] sm:$0x3f] %v3143_v26  ;;  %v4369_v14 = vpop.f32.mrb[16].mxu0 }
 0x1bf   : > { %v3403_v19 = vadd.f32 %v3371_v13, %v3339_v52  ;;  %v4339_v28 = vpop.f32.mrb[12].mxu1  ;;  %v2840_v53 = vpop.f32.mrb[17].mxu0  ;;  %2997 = vst [vmem:[#allocation2 + $0x230] sm:$0xff] %v4369_v14 }
 0x1c0   : > { %3437 = vst [vmem:[#allocation3 + $0xf8] sm:$0x3f] %v3405_v51  ;;  %v2606_v21 = vpop.f32.mrb[13].mxu1  ;;  %v4370_v23 = vpop.f32.mrb[18].mxu0  ;;  %v3344_v31 = vld [vmem:[#allocation2 + $0x212] sm:$0xff]  ;;  %2995 = vst [vmem:[#allocation2 + $0x220] sm:$0xff] %v2840_v53  ;;  %v3252_v42 = vadd.f32 %v4339_v28, %v3188_v49 }
 0x1c1   : > { %3435 = vst [vmem:[#allocation3 + $0xe8] sm:$0x3f] %v3403_v19  ;;  %v4340_v32 = vpop.f32.mrb[14].mxu1  ;;  %v2843_v27 = vpop.f32.mrb[19].mxu0  ;;  %v3376_v33 = vadd.f32 %v3344_v31, %v3248_v54  ;;  %v3342_v35 = vld [vmem:[#allocation2 + $0x202] sm:$0xff]  ;;  %2998 = vst [vmem:[#allocation2 + $0x238] sm:$0xff] %v4370_v23  ;;  %v3250_v24 = vadd.f32 %v3186_v46, %v2606_v21 }
 0x1c2   : > { %v2609_v34 = vpop.f32.mrb[15].mxu1  ;;  %v3374_v39 = vadd.f32 %v3342_v35, %v3246_v29  ;;  %v3253_v41 = vadd.f32 %v4340_v32, %v3189_v37  ;;  %2996 = vst [vmem:[#allocation2 + $0x228] sm:$0xff] %v2843_v27  ;;  %v3345_v43 = vld [vmem:[#allocation2 + $0x21a] sm:$0x3f]  ;;  %v3343_v47 = vld [vmem:[#allocation2 + $0x20a] sm:$0x3f] }
 0x1c3   : > { %v3313_v56 = vld [vmem:[#allocation3 + $0x18] sm:$0x3f]  ;;  %3408 = vst [vmem:[#allocation3 + $0x10] sm:$0xff] %v3376_v33  ;;  %v3480_v45 = vmul.f32 %v5390_v55, %v3376_v33  ;;  %v3251_v36 = vadd.f32 %v3187_v15, %v2609_v34  ;;  %v3192_v23 = vld [vmem:[#allocation3 + $0x50] sm:$0xff]  ;;  %v3190_v49 = vld [vmem:[#allocation3 + $0x40] sm:$0xff] }
 0x1c4   : > { %v3377_v38 = vadd.f32 %v3345_v43, %v3313_v56  ;;  %v3311_v57 = vld [vmem:[#allocation3 + $0x8] sm:$0x3f]  ;;  %3406 = vst [vmem:[#allocation3] sm:$0xff] %v3374_v39  ;;  %v3478_v16 = vmul.f32 %v5390_v55, %v3374_v39  ;;  %3285 = vst [vmem:[#allocation3 + $0x38] sm:$0xff] %v3253_v41 }
 0x1c5   : > { %v3518_v17 = vadd.f32 %v5396_v58, %v3480_v45  ;;  %v3375_v60 = vadd.f32 %v3343_v47, %v3311_v57  ;;  %3283 = vst [vmem:[#allocation3 + $0x28] sm:$0xff] %v3251_v36 }
 0x1c6   : > { %v4373_v40 = vpop.f32.mrb[20].mxu0  ;;  %3409 = vst [vmem:[#allocation3 + $0x18] sm:$0x3f] %v3377_v38  ;;  %v3516_v0 = vadd.f32 %v5396_v58, %v3478_v16 }
 0x1c7   : > { %v3471_v59 = vld [vmem:[#allocation3 + $0xf8] sm:$0xff]  ;;  %v4343_v61 = vpop.f32.mrb[16].mxu1  ;;  %v2856_v18 = vpop.f32.mrb[21].mxu0  ;;  %v3550_v44 = vmax.f32 %v3518_v17, 0.0  ;;  %3407 = vst [vmem:[#allocation3 + $0x8] sm:$0x3f] %v3375_v60 }
 0x1c8   : > { %v3509_v62 = vmul.f32 %v5390_v55, %v3471_v59  ;;  %v3469_v63 = vld [vmem:[#allocation3 + $0xe8] sm:$0xff]  ;;  %v5415_v1 = vpop.f32.mrb[17].mxu1  ;;  %v4374_v20 = vpop.f32.mrb[22].mxu0  ;;  %3001 = vst [vmem:[#allocation2 + $0x250] sm:$0xff] %v4373_v40  ;;  %v3548_v48 = vmax.f32 %v3516_v0, 0.0  ;;  %v3348_v5 = vld [vmem:[#allocation2 + $0x232] sm:$0xff]  ;;  %v3256_v29 = vadd.f32 %v4343_v61, %v3192_v23 }
 0x1c9   : > { %v3507_v22 = vmul.f32 %v5390_v55, %v3469_v63  ;;  %v4344_v2 = vpop.f32.mrb[18].mxu1  ;;  %v2859_v3 = vpop.f32.mrb[23].mxu0  ;;  %2999 = vst [vmem:[#allocation2 + $0x240] sm:$0xff] %v2856_v18  ;;  %3582 = vst [vmem:[%s5405_s15 + $0x10] sm:$0xff] %v3550_v44  ;;  %v3380_v7 = vadd.f32 %v3348_v5, %v3252_v42  ;;  %v3346_v26 = vld [vmem:[#allocation2 + $0x222] sm:$0xff]  ;;  %v3197_v59 = vld [vmem:[#allocation3 + $0x78] sm:$0xff]  ;;  %v3254_v60 = vadd.f32 %v3190_v49, %v5415_v1 }
 0x1ca   : > { %v3547_v4 = vadd.f32 %v5396_v58, %v3509_v62  ;;  %v2625_v6 = vpop.f32.mrb[19].mxu1  ;;  %3002 = vst [vmem:[#allocation2 + $0x258] sm:$0xff] %v4374_v20  ;;  %3580 = vst [vmem:[%s5405_s15] sm:$0xff] %v3548_v48  ;;  %v3378_v10 = vadd.f32 %v3346_v26, %v3250_v24  ;;  %v3257_v11 = vadd.f32 %v4344_v2, %v3193_v8  ;;  %v3349_v52 = vld [vmem:[#allocation2 + $0x23a] sm:$0x3f]  ;;  %v3347_v30 = vld [vmem:[#allocation2 + $0x22a] sm:$0x3f] }
 0x1cb   : > { %v3545_v50 = vadd.f32 %v5396_v58, %v3507_v22  ;;  %v3317_v51 = vld [vmem:[#allocation3 + $0x38] sm:$0x3f]  ;;  %3412 = vst [vmem:[#allocation3 + $0x30] sm:$0xff] %v3380_v7  ;;  %v3484_v14 = vmul.f32 %v5390_v55, %v3380_v7  ;;  %v3255_v19 = vadd.f32 %v3191_v12, %v2625_v6  ;;  %3000 = vst [vmem:[#allocation2 + $0x248] sm:$0xff] %v2859_v3  ;;  %v3195_v61 = vld [vmem:[#allocation3 + $0x68] sm:$0xff] }
 0x1cc   : > { %v3579_v9 = vmax.f32 %v3547_v4, 0.0  ;;  %v3381_v28 = vadd.f32 %v3349_v52, %v3317_v51  ;;  %v3315_v53 = vld [vmem:[#allocation3 + $0x28] sm:$0x3f]  ;;  %3410 = vst [vmem:[#allocation3 + $0x20] sm:$0xff] %v3378_v10  ;;  %v3482_v21 = vmul.f32 %v5390_v55, %v3378_v10  ;;  %3289 = vst [vmem:[#allocation3 + $0x58] sm:$0xff] %v3257_v11  ;;  %v3196_v4 = vld [vmem:[#allocation3 + $0x70] sm:$0xff] }
 0x1cd   : > { %v3577_v13 = vmax.f32 %v3545_v50, 0.0  ;;  %v3443_v25 = vld [vmem:[#allocation3 + $0x18] sm:$0xff]  ;;  %v3522_v32 = vadd.f32 %v5396_v58, %v3484_v14  ;;  %v3379_v27 = vadd.f32 %v3347_v30, %v3315_v53  ;;  %3287 = vst [vmem:[#allocation3 + $0x48] sm:$0xff] %v3255_v19 }
 0x1ce   : > { %3611 = vst [vmem:[%s5405_s15 + $0xf8] sm:$0xff] %v3579_v9  ;;  %v4377_v54 = vpop.f32.mrb[24].mxu0  ;;  %v3481_v33 = vmul.f32 %v5390_v55, %v3443_v25  ;;  %v3441_v35 = vld [vmem:[#allocation3 + $0x8] sm:$0xff]  ;;  %3413 = vst [vmem:[#allocation3 + $0x38] sm:$0x3f] %v3381_v28  ;;  %v3520_v37 = vadd.f32 %v5396_v58, %v3482_v21  ;;  %v3194_v28 = vld [vmem:[#allocation3 + $0x60] sm:$0xff] }
 0x1cf   : > { %3609 = vst [vmem:[%s5405_s15 + $0xe8] sm:$0xff] %v3577_v13  ;;  %v4347_v31 = vpop.f32.mrb[20].mxu1  ;;  %v2872_v34 = vpop.f32.mrb[25].mxu0  ;;  %v3479_v15 = vmul.f32 %v5390_v55, %v3441_v35  ;;  %v3554_v56 = vmax.f32 %v3522_v32, 0.0  ;;  %3411 = vst [vmem:[#allocation3 + $0x28] sm:$0x3f] %v3379_v27 }
 0x1d0   : > { %v5429_v39 = vpop.f32.mrb[21].mxu1  ;;  %v4378_v41 = vpop.f32.mrb[26].mxu0  ;;  %3005 = vst [vmem:[#allocation2 + $0x270] sm:$0xff] %v4377_v54  ;;  %v3519_v36 = vadd.f32 %v5396_v58, %v3481_v33  ;;  %v3552_v38 = vmax.f32 %v3520_v37, 0.0  ;;  %3003 = vst [vmem:[#allocation2 + $0x260] sm:$0xff] %v2872_v34  ;;  %v3260_v6 = vadd.f32 %v4347_v31, %v3196_v4  ;;  %v3201_v25 = vld [vmem:[#allocation3 + $0x98] sm:$0xff] }
 0x1d1   : > { %v4348_v43 = vpop.f32.mrb[22].mxu1  ;;  %v2875_v45 = vpop.f32.mrb[27].mxu0  ;;  %v3352_v57 = vld [vmem:[#allocation2 + $0x252] sm:$0xff]  ;;  %v3517_v16 = vadd.f32 %v5396_v58, %v3479_v15  ;;  %3586 = vst [vmem:[%s5405_s15 + $0x30] sm:$0xff] %v3554_v56  ;;  %3006 = vst [vmem:[#allocation2 + $0x278] sm:$0xff] %v4378_v41  ;;  %v3258_v23 = vadd.f32 %v3194_v28, %v5429_v39  ;;  %v3199_v31 = vld [vmem:[#allocation3 + $0x88] sm:$0xff] }
 0x1d2   : > { %v2641_v47 = vpop.f32.mrb[23].mxu1  ;;  %v3384_v40 = vadd.f32 %v3352_v57, %v3256_v29  ;;  %v3551_v17 = vmax.f32 %v3519_v36, 0.0  ;;  %3584 = vst [vmem:[%s5405_s15 + $0x20] sm:$0xff] %v3552_v38  ;;  %v3261_v42 = vadd.f32 %v4348_v43, %v3197_v59  ;;  %v3353_v63 = vld [vmem:[#allocation2 + $0x25a] sm:$0x3f]  ;;  %v3350_v20 = vld [vmem:[#allocation2 + $0x242] sm:$0xff] }
 0x1d3   : > { %v3549_v18 = vmax.f32 %v3517_v16, 0.0  ;;  %v3321_v62 = vld [vmem:[#allocation3 + $0x58] sm:$0x3f]  ;;  %v3259_v22 = vadd.f32 %v3195_v61, %v2641_v47  ;;  %v3351_v2 = vld [vmem:[#allocation2 + $0x24a] sm:$0x3f]  ;;  %v3382_v3 = vadd.f32 %v3350_v20, %v3254_v60  ;;  %3004 = vst [vmem:[#allocation2 + $0x268] sm:$0xff] %v2875_v45 }
 0x1d4   : > { %3416 = vst [vmem:[#allocation3 + $0x50] sm:$0xff] %v3384_v40  ;;  %v3488_v0 = vmul.f32 %v5390_v55, %v3384_v40  ;;  %3583 = vst [vmem:[%s5405_s15 + $0x18] sm:$0xff] %v3551_v17  ;;  %v3385_v44 = vadd.f32 %v3353_v63, %v3321_v62  ;;  %v3319_v46 = vld [vmem:[#allocation3 + $0x48] sm:$0x3f]  ;;  %v3200_v36 = vld [vmem:[#allocation3 + $0x90] sm:$0xff] }
 0x1d5   : > { %3293 = vst [vmem:[#allocation3 + $0x78] sm:$0xff] %v3261_v42  ;;  %3581 = vst [vmem:[%s5405_s15 + $0x8] sm:$0xff] %v3549_v18  ;;  %v3447_v48 = vld [vmem:[#allocation3 + $0x38] sm:$0xff]  ;;  %v3383_v5 = vadd.f32 %v3351_v2, %v3319_v46  ;;  %v3486_v9 = vmul.f32 %v5390_v55, %v3382_v3  ;;  %v3198_v46 = vld [vmem:[#allocation3 + $0x80] sm:$0xff] }
 0x1d6   : > { %v4381_v1 = vpop.f32.mrb[28].mxu0  ;;  %v3526_v24 = vadd.f32 %v5396_v58, %v3488_v0  ;;  %3291 = vst [vmem:[#allocation3 + $0x68] sm:$0xff] %v3259_v22  ;;  %v3485_v26 = vmul.f32 %v5390_v55, %v3447_v48  ;;  %v3445_v8 = vld [vmem:[#allocation3 + $0x28] sm:$0xff]  ;;  %3417 = vst [vmem:[#allocation3 + $0x58] sm:$0x3f] %v3385_v44 }
 0x1d7   : > { %v4351_v50 = vpop.f32.mrb[24].mxu1  ;;  %v2888_v7 = vpop.f32.mrb[29].mxu0  ;;  %3414 = vst [vmem:[#allocation3 + $0x40] sm:$0xff] %v3382_v3  ;;  %v3483_v12 = vmul.f32 %v5390_v55, %v3445_v8  ;;  %3415 = vst [vmem:[#allocation3 + $0x48] sm:$0x3f] %v3383_v5  ;;  %v3524_v19 = vadd.f32 %v5396_v58, %v3486_v9 }
 0x1d8   : > { %v5443_v10 = vpop.f32.mrb[25].mxu1  ;;  %v4382_v11 = vpop.f32.mrb[30].mxu0  ;;  %v3558_v13 = vmax.f32 %v3526_v24, 0.0  ;;  %3009 = vst [vmem:[#allocation2 + $0x290] sm:$0xff] %v4381_v1  ;;  %v3523_v14 = vadd.f32 %v5396_v58, %v3485_v26  ;;  %v3356_v53 = vld [vmem:[#allocation2 + $0x272] sm:$0xff]  ;;  %3007 = vst [vmem:[#allocation2 + $0x280] sm:$0xff] %v2888_v7  ;;  %v3264_v49 = vadd.f32 %v4351_v50, %v3200_v36 }
 0x1d9   : > { %v4352_v51 = vpop.f32.mrb[26].mxu1  ;;  %v2891_v52 = vpop.f32.mrb[31].mxu0  ;;  %v3521_v21 = vadd.f32 %v5396_v58, %v3483_v12  ;;  %v3388_v54 = vadd.f32 %v3356_v53, %v3260_v6  ;;  %3010 = vst [vmem:[#allocation2 + $0x298] sm:$0xff] %v4382_v11  ;;  %v3556_v27 = vmax.f32 %v3524_v19, 0.0  ;;  %v3357_v35 = vld [vmem:[#allocation2 + $0x27a] sm:$0x3f]  ;;  %v3262_v1 = vadd.f32 %v3198_v46, %v5443_v10 }
 0x1da   : > { %v2657_v30 = vpop.f32.mrb[27].mxu1  ;;  %3590 = vst [vmem:[%s5405_s15 + $0x50] sm:$0xff] %v3558_v13  ;;  %v3555_v32 = vmax.f32 %v3523_v14, 0.0  ;;  %v3265_v29 = vadd.f32 %v4352_v51, %v3201_v25  ;;  %v3354_v41 = vld [vmem:[#allocation2 + $0x262] sm:$0xff]  ;;  %v3355_v43 = vld [vmem:[#allocation2 + $0x26a] sm:$0x3f] }
 0x1db   : > { %v3553_v34 = vmax.f32 %v3521_v21, 0.0  ;;  %3420 = vst [vmem:[#allocation3 + $0x70] sm:$0xff] %v3388_v54  ;;  %v3492_v37 = vmul.f32 %v5390_v55, %v3388_v54  ;;  %v3263_v15 = vadd.f32 %v3199_v31, %v2657_v30  ;;  %3588 = vst [vmem:[%s5405_s15 + $0x40] sm:$0xff] %v3556_v27  ;;  %v3386_v45 = vadd.f32 %v3354_v41, %v3258_v23  ;;  %v3205_v24 = vld [vmem:[#allocation3 + $0xb8] sm:$0xff]  ;;  %v3203_v7 = vld [vmem:[#allocation3 + $0xa8] sm:$0xff] }
 0x1dc   : > { %v3325_v33 = vld [vmem:[#allocation3 + $0x78] sm:$0x3f]  ;;  %3587 = vst [vmem:[%s5405_s15 + $0x38] sm:$0xff] %v3555_v32  ;;  %3297 = vst [vmem:[#allocation3 + $0x98] sm:$0xff] %v3265_v29  ;;  %v3204_v19 = vld [vmem:[#allocation3 + $0xb0] sm:$0xff] }
 0x1dd   : > { %v3389_v39 = vadd.f32 %v3357_v35, %v3325_v33  ;;  %v3323_v56 = vld [vmem:[#allocation3 + $0x68] sm:$0x3f]  ;;  %3008 = vst [vmem:[#allocation2 + $0x288] sm:$0xff] %v2891_v52  ;;  %3585 = vst [vmem:[%s5405_s15 + $0x28] sm:$0xff] %v3553_v34  ;;  %v3451_v57 = vld [vmem:[#allocation3 + $0x58] sm:$0xff]  ;;  %v3530_v47 = vadd.f32 %v5396_v58, %v3492_v37  ;;  %v3490_v42 = vmul.f32 %v5390_v55, %v3386_v45 }
 0x1de   : > { %v4385_v38 = vpop.f32.mrb[32].mxu0  ;;  %v3387_v16 = vadd.f32 %v3355_v43, %v3323_v56  ;;  %3295 = vst [vmem:[#allocation3 + $0x88] sm:$0xff] %v3263_v15  ;;  %v3489_v17 = vmul.f32 %v5390_v55, %v3451_v57  ;;  %v3449_v60 = vld [vmem:[#allocation3 + $0x48] sm:$0xff]  ;;  %3418 = vst [vmem:[#allocation3 + $0x60] sm:$0xff] %v3386_v45  ;;  %v3202_v56 = vld [vmem:[#allocation3 + $0xa0] sm:$0xff] }
 0x1df   : > { %v4355_v40 = vpop.f32.mrb[28].mxu1  ;;  %v2904_v59 = vpop.f32.mrb[33].mxu0  ;;  %3421 = vst [vmem:[#allocation3 + $0x78] sm:$0x3f] %v3389_v39  ;;  %v3487_v62 = vmul.f32 %v5390_v55, %v3449_v60  ;;  %v3562_v63 = vmax.f32 %v3530_v47, 0.0  ;;  %3013 = vst [vmem:[#allocation2 + $0x2b0] sm:$0xff] %v4385_v38  ;;  %v3528_v44 = vadd.f32 %v5396_v58, %v3490_v42 }
 0x1e0   : > { %v5458_v61 = vpop.f32.mrb[29].mxu1  ;;  %v4386_v18 = vpop.f32.mrb[34].mxu0  ;;  %3419 = vst [vmem:[#allocation3 + $0x68] sm:$0x3f] %v3387_v16  ;;  %v3527_v22 = vadd.f32 %v5396_v58, %v3489_v17  ;;  %v3360_v2 = vld [vmem:[#allocation2 + $0x292] sm:$0xff]  ;;  %3011 = vst [vmem:[#allocation2 + $0x2a0] sm:$0xff] %v2904_v59  ;;  %v3268_v23 = vadd.f32 %v4355_v40, %v3204_v19 }
 0x1e1   : > { %v4356_v0 = vpop.f32.mrb[30].mxu1  ;;  %v2907_v20 = vpop.f32.mrb[35].mxu0  ;;  %v3525_v4 = vadd.f32 %v5396_v58, %v3487_v62  ;;  %3594 = vst [vmem:[%s5405_s15 + $0x70] sm:$0xff] %v3562_v63  ;;  %v3392_v48 = vadd.f32 %v3360_v2, %v3264_v49  ;;  %3014 = vst [vmem:[#allocation2 + $0x2b8] sm:$0xff] %v4386_v18  ;;  %v3560_v6 = vmax.f32 %v3528_v44, 0.0  ;;  %v3266_v38 = vadd.f32 %v3202_v56, %v5458_v61  ;;  %v3209_v47 = vld [vmem:[#allocation3 + $0xd8] sm:$0xff] }
 0x1e2   : > { %v2673_v3 = vpop.f32.mrb[31].mxu1  ;;  %v3559_v5 = vmax.f32 %v3527_v22, 0.0  ;;  %v3269_v50 = vadd.f32 %v4356_v0, %v3205_v24  ;;  %v3361_v9 = vld [vmem:[#allocation2 + $0x29a] sm:$0x3f]  ;;  %3012 = vst [vmem:[#allocation2 + $0x2a8] sm:$0xff] %v2907_v20  ;;  %v3207_v59 = vld [vmem:[#allocation3 + $0xc8] sm:$0xff] }
 0x1e3   : > { %v3557_v26 = vmax.f32 %v3525_v4, 0.0  ;;  %v3329_v8 = vld [vmem:[#allocation3 + $0x98] sm:$0x3f]  ;;  %3424 = vst [vmem:[#allocation3 + $0x90] sm:$0xff] %v3392_v48  ;;  %v3496_v11 = vmul.f32 %v5390_v55, %v3392_v48  ;;  %v3267_v13 = vadd.f32 %v3203_v7, %v2673_v3  ;;  %3592 = vst [vmem:[%s5405_s15 + $0x60] sm:$0xff] %v3560_v6  ;;  %v3208_v48 = vld [vmem:[#allocation3 + $0xd0] sm:$0xff] }
 0x1e4   : > { %v3358_v12 = vld [vmem:[#allocation2 + $0x282] sm:$0xff]  ;;  %3591 = vst [vmem:[%s5405_s15 + $0x58] sm:$0xff] %v3559_v5  ;;  %v3393_v10 = vadd.f32 %v3361_v9, %v3329_v8  ;;  %v3359_v52 = vld [vmem:[#allocation2 + $0x28a] sm:$0x3f]  ;;  %3301 = vst [vmem:[#allocation3 + $0xb8] sm:$0xff] %v3269_v50 }
 0x1e5   : > { %v3327_v51 = vld [vmem:[#allocation3 + $0x88] sm:$0x3f]  ;;  %v3390_v14 = vadd.f32 %v3358_v12, %v3262_v1  ;;  %3589 = vst [vmem:[%s5405_s15 + $0x48] sm:$0xff] %v3557_v26  ;;  %v3534_v30 = vadd.f32 %v5396_v58, %v3496_v11  ;;  %3299 = vst [vmem:[#allocation3 + $0xa8] sm:$0xff] %v3267_v13  ;;  %v3206_v9 = vld [vmem:[#allocation3 + $0xc0] sm:$0xff] }
 0x1e6   : > { %v4389_v28 = vpop.f32.mrb[36].mxu0  ;;  %v3455_v53 = vld [vmem:[#allocation3 + $0x78] sm:$0xff]  ;;  %v3391_v21 = vadd.f32 %v3359_v52, %v3327_v51  ;;  %3425 = vst [vmem:[#allocation3 + $0x98] sm:$0x3f] %v3393_v10 }
 0x1e7   : > { %v4359_v54 = vpop.f32.mrb[32].mxu1  ;;  %v2920_v25 = vpop.f32.mrb[37].mxu0  ;;  %v3493_v32 = vmul.f32 %v5390_v55, %v3455_v53  ;;  %v3453_v27 = vld [vmem:[#allocation3 + $0x68] sm:$0xff]  ;;  %3422 = vst [vmem:[#allocation3 + $0x80] sm:$0xff] %v3390_v14  ;;  %v3494_v29 = vmul.f32 %v5390_v55, %v3390_v14  ;;  %v3566_v35 = vmax.f32 %v3534_v30, 0.0  ;;  %3017 = vst [vmem:[#allocation2 + $0x2d0] sm:$0xff] %v4389_v28 }
 0x1e8   : > { %v5473_v31 = vpop.f32.mrb[33].mxu1  ;;  %v4390_v34 = vpop.f32.mrb[38].mxu0  ;;  %v3491_v33 = vmul.f32 %v5390_v55, %v3453_v27  ;;  %3423 = vst [vmem:[#allocation3 + $0x88] sm:$0x3f] %v3391_v21  ;;  %v3364_v43 = vld [vmem:[#allocation2 + $0x2b2] sm:$0xff]  ;;  %3015 = vst [vmem:[#allocation2 + $0x2c0] sm:$0xff] %v2920_v25  ;;  %v3272_v6 = vadd.f32 %v4359_v54, %v3208_v48 }
 0x1e9   : > { %v4360_v37 = vpop.f32.mrb[34].mxu1  ;;  %v2923_v41 = vpop.f32.mrb[39].mxu0  ;;  %v3531_v15 = vadd.f32 %v5396_v58, %v3493_v32  ;;  %v3532_v39 = vadd.f32 %v5396_v58, %v3494_v29  ;;  %3598 = vst [vmem:[%s5405_s15 + $0x90] sm:$0xff] %v3566_v35  ;;  %v3396_v57 = vadd.f32 %v3364_v43, %v3268_v23  ;;  %3018 = vst [vmem:[#allocation2 + $0x2d8] sm:$0xff] %v4390_v34  ;;  %v3365_v42 = vld [vmem:[#allocation2 + $0x2ba] sm:$0x3f] }
 0x1ea   : > { %v2689_v45 = vpop.f32.mrb[35].mxu1  ;;  %v3529_v36 = vadd.f32 %v5396_v58, %v3491_v33  ;;  %v3273_v40 = vadd.f32 %v4360_v37, %v3209_v47  ;;  %v3362_v62 = vld [vmem:[#allocation2 + $0x2a2] sm:$0xff]  ;;  %v3363_v20 = vld [vmem:[#allocation2 + $0x2aa] sm:$0x3f]  ;;  %3016 = vst [vmem:[#allocation2 + $0x2c8] sm:$0xff] %v2923_v41  ;;  %v3270_v10 = vadd.f32 %v3206_v9, %v5473_v31 }
 0x1eb   : > { %v3563_v16 = vmax.f32 %v3531_v15, 0.0  ;;  %v3564_v49 = vmax.f32 %v3532_v39, 0.0  ;;  %v3333_v60 = vld [vmem:[#allocation3 + $0xb8] sm:$0x3f]  ;;  %3428 = vst [vmem:[#allocation3 + $0xb0] sm:$0xff] %v3396_v57  ;;  %v3500_v18 = vmul.f32 %v5390_v55, %v3396_v57  ;;  %v3271_v63 = vadd.f32 %v3207_v59, %v2689_v45 }
 0x1ec   : > { %v3561_v17 = vmax.f32 %v3529_v36, 0.0  ;;  %v3397_v61 = vadd.f32 %v3365_v42, %v3333_v60  ;;  %v3331_v0 = vld [vmem:[#allocation3 + $0xa8] sm:$0x3f]  ;;  %v3394_v22 = vadd.f32 %v3362_v62, %v3266_v38  ;;  %3305 = vst [vmem:[#allocation3 + $0xd8] sm:$0xff] %v3273_v40 }
 0x1ed   : > { %3595 = vst [vmem:[%s5405_s15 + $0x78] sm:$0xff] %v3563_v16  ;;  %3596 = vst [vmem:[%s5405_s15 + $0x80] sm:$0xff] %v3564_v49  ;;  %v3459_v44 = vld [vmem:[#allocation3 + $0x98] sm:$0xff]  ;;  %v3538_v46 = vadd.f32 %v5396_v58, %v3500_v18  ;;  %v3395_v2 = vadd.f32 %v3363_v20, %v3331_v0 }
 0x1ee   : > { %3593 = vst [vmem:[%s5405_s15 + $0x68] sm:$0xff] %v3561_v17  ;;  %3303 = vst [vmem:[#allocation3 + $0xc8] sm:$0xff] %v3271_v63  ;;  %v3497_v3 = vmul.f32 %v5390_v55, %v3459_v44  ;;  %v3498_v1 = vmul.f32 %v5390_v55, %v3394_v22 }
 0x1ef   : > { %v3457_v4 = vld [vmem:[#allocation3 + $0x88] sm:$0xff]  ;;  %3429 = vst [vmem:[#allocation3 + $0xb8] sm:$0x3f] %v3397_v61  ;;  %3426 = vst [vmem:[#allocation3 + $0xa0] sm:$0xff] %v3394_v22  ;;  %v3570_v5 = vmax.f32 %v3538_v46, 0.0 }
 0x1f0   : > { %v3495_v24 = vmul.f32 %v5390_v55, %v3457_v4  ;;  %3427 = vst [vmem:[#allocation3 + $0xa8] sm:$0x3f] %v3395_v2  ;;  %v3535_v50 = vadd.f32 %v5396_v58, %v3497_v3  ;;  %v3536_v7 = vadd.f32 %v5396_v58, %v3498_v1  ;;  %v3368_v26 = vld [vmem:[#allocation2 + $0x2d2] sm:$0xff]  ;;  %v3369_v14 = vld [vmem:[#allocation2 + $0x2da] sm:$0x3f] }
 0x1f1   : > { %3602 = vst [vmem:[%s5405_s15 + $0xb0] sm:$0xff] %v3570_v5  ;;  %v3400_v11 = vadd.f32 %v3368_v26, %v3272_v6  ;;  %v3366_v28 = vld [vmem:[#allocation2 + $0x2c2] sm:$0xff]  ;;  %v3367_v21 = vld [vmem:[#allocation2 + $0x2ca] sm:$0x3f] }
 0x1f2   : > { %v3533_v8 = vadd.f32 %v5396_v58, %v3495_v24  ;;  %v3567_v12 = vmax.f32 %v3535_v50, 0.0  ;;  %v3568_v13 = vmax.f32 %v3536_v7, 0.0  ;;  %v3398_v23 = vadd.f32 %v3366_v28, %v3270_v10 }
 0x1f3   : > { %v3337_v52 = vld [vmem:[#allocation3 + $0xd8] sm:$0x3f]  ;;  %3432 = vst [vmem:[#allocation3 + $0xd0] sm:$0xff] %v3400_v11  ;;  %v3504_v19 = vmul.f32 %v5390_v55, %v3400_v11 }
 0x1f4   : > { %v3565_v51 = vmax.f32 %v3533_v8, 0.0  ;;  %3599 = vst [vmem:[%s5405_s15 + $0x98] sm:$0xff] %v3567_v12  ;;  %3600 = vst [vmem:[%s5405_s15 + $0xa0] sm:$0xff] %v3568_v13  ;;  %v3401_v53 = vadd.f32 %v3369_v14, %v3337_v52  ;;  %v3502_v31 = vmul.f32 %v5390_v55, %v3398_v23 }
 0x1f5   : > { %v3335_v30 = vld [vmem:[#allocation3 + $0xc8] sm:$0x3f]  ;;  %v3542_v25 = vadd.f32 %v5396_v58, %v3504_v19  ;;  %3430 = vst [vmem:[#allocation3 + $0xc0] sm:$0xff] %v3398_v23 }
 0x1f6   : > { %3597 = vst [vmem:[%s5405_s15 + $0x88] sm:$0xff] %v3565_v51  ;;  %v3463_v54 = vld [vmem:[#allocation3 + $0xb8] sm:$0xff]  ;;  %v3399_v32 = vadd.f32 %v3367_v21, %v3335_v30  ;;  %3433 = vst [vmem:[#allocation3 + $0xd8] sm:$0x3f] %v3401_v53  ;;  %v3540_v37 = vadd.f32 %v5396_v58, %v3502_v31 }
 0x1f7   : > { %v3501_v27 = vmul.f32 %v5390_v55, %v3463_v54  ;;  %v3461_v29 = vld [vmem:[#allocation3 + $0xa8] sm:$0xff]  ;;  %v3574_v33 = vmax.f32 %v3542_v25, 0.0 }
 0x1f8   : > { %v3499_v34 = vmul.f32 %v5390_v55, %v3461_v29  ;;  %3431 = vst [vmem:[#allocation3 + $0xc8] sm:$0x3f] %v3399_v32  ;;  %v3572_v39 = vmax.f32 %v3540_v37, 0.0  ;;  %v4976_v55 = vld [vmem:[%s5527_s2] ss:$0 sm:$0xff] }
 0x1f9   : > { %v3539_v35 = vadd.f32 %v5396_v58, %v3501_v27  ;;  %3606 = vst [vmem:[%s5405_s15 + $0xd0] sm:$0xff] %v3574_v33 }
 0x1fa   : > { %v3537_v41 = vadd.f32 %v5396_v58, %v3499_v34  ;;  %3604 = vst [vmem:[%s5405_s15 + $0xc0] sm:$0xff] %v3572_v39 }
 0x1fb   : > { %v3571_v15 = vmax.f32 %v3539_v35, 0.0 }
 0x1fc   : > { %v3569_v56 = vmax.f32 %v3537_v41, 0.0 }
 0x1fd   : > { %3603 = vst [vmem:[%s5405_s15 + $0xb8] sm:$0xff] %v3571_v15  ;;  %v3467_v43 = vld [vmem:[#allocation3 + $0xd8] sm:$0xff] }
 0x1fe   : > { %3601 = vst [vmem:[%s5405_s15 + $0xa8] sm:$0xff] %v3569_v56  ;;  %v3505_v45 = vmul.f32 %v4976_v55, %v3467_v43 }
 0x1ff   : > { %v3465_v36 = vld [vmem:[#allocation3 + $0xc8] sm:$0xff] }
 0x200   : > { %v3503_v38 = vmul.f32 %v4976_v55, %v3465_v36  ;;  %v3543_v57 = vadd.f32 %v5396_v58, %v3505_v45 }
 0x202   : > { %v3541_v47 = vadd.f32 %v5396_v58, %v3503_v38  ;;  %v3575_v16 = vmax.f32 %v3543_v57, 0.0 }
 0x204   : > { %v3573_v49 = vmax.f32 %v3541_v47, 0.0  ;;  %3607 = vst [vmem:[%s5405_s15 + $0xd8] sm:$0xff] %v3575_v16 }
 0x206   : > { %3605 = vst [vmem:[%s5405_s15 + $0xc8] sm:$0xff] %v3573_v49 }
 0x207 PF: > { %s14_s17 = sadd.s32 1, %s4999_s17   ;;  %s5530_s15 = smov %s4995_s16 }
 0x208   : > { %p11_p5 = scmp.ge.s32.totalorder %s14_s17, 4   ;;  %s5531_s16 = smov %s5533_s18 }
 0x20a   :  { %13 = sbr.rel (!%p11_p5) target bundleno = 2 (0x2), region = 97 }

</bundles_post_ra>
